<compile_context>
chip_gen: v7x
topology: tpu7x:2x2x1
jax: 0.10.0
libtpu: 0.0.40
codegen_flags: <defaults>
</compile_context>

<pallas_src>
import math

import jax
import jax.numpy as jnp
from jax import lax
from jax.experimental import pallas as pl
from jax.experimental.pallas import tpu as pltpu


_VPU_PROP_MAX_N = 16   # up to this many nodes per graph, propagate on the VPU


def _make_ast_encoder_kernel(block_b, num_nodes, feat_dim, num_layers,
                             compute_dtype):
  """Kernel processing `block_b` graphs per grid step."""
  Bb, N, D, L = block_b, num_nodes, feat_dim, num_layers
  use_vpu_prop = N <= _VPU_PROP_MAX_N

  def kernel(adj_ref, x_ref, w_ref, o_ref):
    # adj_ref: (Bb, N, N) raw adjacency A (self loops folded in below)
    # x_ref:   (Bb, N, D) node features
    # w_ref:   (L, D, D)  stacked GCN weights, already in compute_dtype
    # o_ref:   (Bb, N, D) output embeddings
    a_f32 = adj_ref[...].astype(jnp.float32)                # (Bb, N, N)

    # d[i] = (1 + colsum_i(A))^-1/2 ; the +1 is the folded self loop of A+I.
    # Built directly in (Bb, N, 1) "row-scale" orientation -> no reshape or
    # transpose of lane-oriented vectors is ever needed.
    if use_vpu_prop:
      deg = jnp.concatenate(
          [jnp.sum(a_f32[:, :, i:i + 1], axis=1, keepdims=True)
           for i in range(N)], axis=1)                       # (Bb, N, 1)
    else:
      deg = jnp.swapaxes(jnp.sum(a_f32, axis=1, keepdims=True), 1, 2)
    d_col = lax.rsqrt(deg + 1.0)                             # (Bb, N, 1) f32

    if not use_vpu_prop:
      a_c = adj_ref[...].astype(compute_dtype)               # 0/1 exact in bf16

    # Stacked GCN layers: out = relu(adj @ out @ W_l), f32 carry.
    out = x_ref[...].astype(jnp.float32)                     # (Bb, N, D)
    for layer in range(L):
      s = d_col * out                                        # (Bb, N, D) f32
      if use_vpu_prop:
        # t[b,i,:] = sum_j A[b,j,i] * s[b,j,:]
        # N unrolled VPU multiply + sublane-reduce steps (slices are lane
        # slices of the adjacency block); no per-graph MXU matmuls, no
        # transposes, no VMEM scratch.  Not hoisted across layers on purpose
        # to keep the transient (Bb,N,1) broadcasts' live ranges short.
        t = jnp.concatenate(
            [jnp.sum(a_f32[:, :, i:i + 1] * s, axis=1, keepdims=True)
             for i in range(N)], axis=1)                     # (Bb, N, D) f32
      else:
        # Large-N fallback: batched transposed-LHS contraction on the MXU.
        t = lax.dot_general(a_c, s.astype(compute_dtype),
                            dimension_numbers=(((1,), (1,)), ((0,), (0,))),
                            preferred_element_type=jnp.float32)
      h = d_col * (t + s)                                    # == adj @ out
      # Feature mix: one lane-dense (Bb*N, D) @ (D, D) MXU matmul per layer.
      z = jnp.dot(h.reshape(Bb * N, D).astype(compute_dtype), w_ref[layer],
                  preferred_element_type=jnp.float32)
      out = jnp.maximum(z, 0.0).reshape(Bb, N, D)            # ReLU

    o_ref[...] = out.astype(o_ref.dtype)

  return kernel


def _round_up(x, m):
  return ((x + m - 1) // m) * m


def _pick_block_b(batch, num_nodes, feat_dim,
                  *, vmem_budget_bytes=16 << 20, target_step_bytes=4 << 20,
                  min_grid=2):
  """Bytes-based block-size picker.

  Packs as many graphs per grid step as a conservative VMEM working-set budget
  allows (lane padding to 128 included), bounded by a target of a few MiB of
  HBM traffic per step, while keeping at least `min_grid` grid steps so the
  'parallel' batch axis can shard across v7x's two TensorCores.  The 16 MiB
  working set + 40 MiB scoped limit is safe on v5e/v6e (128 MiB physical VMEM)
  and v7x (64 MiB physical)."""
  sub, lane = 8, 128
  adj_tile = _round_up(num_nodes, sub) * _round_up(num_nodes, lane) * 4
  feat_tile = _round_up(num_nodes, sub) * _round_up(feat_dim, lane) * 4
  # double-buffered pipelined blocks (adj, x, out) + live f32 copies/temps
  per_graph_vmem = 5 * adj_tile + 10 * feat_tile
  bb_vmem = vmem_budget_bytes // per_graph_vmem
  raw_step_bytes = (num_nodes * num_nodes + 2 * num_nodes * feat_dim) * 4
  bb_hbm = target_step_bytes // max(raw_step_bytes, 1)
  bb = int(max(1, min(bb_vmem, bb_hbm)))
  if batch >= min_grid:
    bb = min(bb, -(-batch // min_grid))   # keep >= min_grid grid steps
  return max(1, min(bb, batch))


def ast_encoder_forward(ast_nodes, ast_adjs, weights, lens=None,
                        attn_mask=None, *, block_b=None,
                        compute_dtype=jnp.bfloat16):
  """ASTEncoder.forward (ifGCN=True): [B,N,D], [B,N,N], [L,D,D] -> [B,N,D].

  `lens` / `attn_mask` are accepted for signature parity but unused, exactly
  as in the PyTorch module.  `compute_dtype` is the MXU operand dtype for the
  feature-mix matmul; all normalization and accumulation math stays in f32.
  """
  del lens, attn_mask  # unused by the GCN branch of the module
  B, N, D = ast_nodes.shape
  L = weights.shape[0]
  assert ast_adjs.shape == (B, N, N), ast_adjs.shape
  assert weights.shape == (L, D, D), weights.shape

  if block_b is None:
    block_b = _pick_block_b(B, N, D)

  # Zero-pad the batch so any B (odd / prime) maps onto full blocks.  Padded
  # graphs have A = 0 (degree 1 after the folded +I) and zero features, so
  # they produce zero outputs and no NaNs; they are sliced off below.
  b_pad = _round_up(B, block_b)
  if b_pad != B:
    pad = ((0, b_pad - B), (0, 0), (0, 0))
    ast_nodes = jnp.pad(ast_nodes, pad)
    ast_adjs = jnp.pad(ast_adjs, pad)
  grid = (b_pad // block_b,)

  weights_c = weights.astype(compute_dtype)   # pre-cast once, wrapper-side

  kernel = _make_ast_encoder_kernel(block_b, N, D, L, compute_dtype)

  out = pl.pallas_call(
      kernel,
      out_shape=jax.ShapeDtypeStruct((b_pad, N, D), ast_nodes.dtype),
      grid_spec=pltpu.PrefetchScalarGridSpec(
          num_scalar_prefetch=0,
          grid=grid,
          in_specs=[
              # Block of `block_b` graphs per step: one contiguous DMA,
              # amortizes the ~0.35us/step pipeline overhead.
              pl.BlockSpec((block_b, N, N), lambda i: (i, 0, 0)),
              pl.BlockSpec((block_b, N, D), lambda i: (i, 0, 0)),
              # Shared weight stack: constant block index -> fetched once.
              pl.BlockSpec((L, D, D), lambda i: (0, 0, 0)),
          ],
          out_specs=pl.BlockSpec((block_b, N, D), lambda i: (i, 0, 0)),
      ),
      compiler_params=pltpu.CompilerParams(
          # Batch-block axis is embarrassingly parallel -> shards across both
          # TensorCores on v7x; harmless on single-TC v5e/v6e.
          dimension_semantics=("parallel",),
          # Raise the scoped VMEM limit above v5e's 16 MiB default while
          # staying well under v7x's 64 MiB physical VMEM.
          vmem_limit_bytes=40 << 20),
  )(ast_adjs, ast_nodes, weights_c)

  return out[:B] if b_pad != B else out


def init_gcn_weights(key, num_layers, in_features, out_features):
  """Matches GCN.reset_parameters(): uniform(-stdv, stdv), stdv=1/sqrt(out)."""
  stdv = 1.0 / math.sqrt(out_features)
  return jax.random.uniform(
      key, (num_layers, in_features, out_features),
      minval=-stdv, maxval=stdv, dtype=jnp.float32)


if __name__ == "__main__":
  # Small shapes consistent with the module's forward:
  #   gcn_layers=2, gcn_in=gcn_out=32 (must match to chain layers), B=4, N=8.
  B, N, D, L = 4, 8, 32, 2

  key = jax.random.PRNGKey(0)
  k_nodes, k_adj, k_w = jax.random.split(key, 3)

  ast_nodes = jax.random.normal(k_nodes, (B, N, D), dtype=jnp.float32)

  # Random symmetric 0/1 adjacency (no self loops; gen_adj adds I).
  raw = jax.random.bernoulli(k_adj, 0.4, (B, N, N)).astype(jnp.float32)
  ast_adjs = jnp.clip(raw + jnp.swapaxes(raw, 1, 2), 0.0, 1.0)
  ast_adjs = ast_adjs * (1.0 - jnp.eye(N, dtype=jnp.float32)[None])

  weights = init_gcn_weights(k_w, L, D, D)

  # Pure-JAX reference with the original torch formulation of gen_adj + GCN.
  def ref_forward(x, A, W):
    A = A + jnp.eye(A.shape[1], dtype=A.dtype)[None]
    dvec = jnp.power(jnp.sum(A, axis=1), -0.5)
    Dm = jax.vmap(jnp.diag)(dvec)
    adj = jnp.matmul(jnp.swapaxes(jnp.matmul(A, Dm), 1, 2), Dm)
    out = x
    for l in range(W.shape[0]):
      out = jax.nn.relu(jnp.matmul(jnp.matmul(adj, out), W[l]))
    return out

  ref = ref_forward(ast_nodes, ast_adjs, weights)

  # Full-precision path (strict check); explicit block_b=3 exercises the
  # batch-padding path (B=4 -> padded 6, two grid steps).
  out_f32 = ast_encoder_forward(ast_nodes, ast_adjs, weights,
                                block_b=3, compute_dtype=jnp.float32)
  jax.block_until_ready(out_f32)
  assert out_f32.shape == (B, N, D), out_f32.shape
  assert jnp.allclose(out_f32, ref, atol=1e-4, rtol=1e-4), "f32 mismatch vs reference"

  # bf16 MXU-operand path (v5e/v6e/v7x fast path), auto bytes-based block size.
  out_bf16 = ast_encoder_forward(ast_nodes, ast_adjs, weights,
                                 compute_dtype=jnp.bfloat16)
  jax.block_until_ready(out_bf16)
  assert jnp.allclose(out_bf16, ref, atol=5e-2, rtol=5e-2), "bf16 mismatch vs reference"

  print("KERNEL_OK")
</pallas_src>

<mosaic_0001>
module attributes {stable_mosaic.version = 11 : i64} {
  func.func @kernel(%arg0: i32, %arg1: memref<3x8x8xf32, #tpu.memory_space<vmem>>, %arg2: memref<3x8x32xf32, #tpu.memory_space<vmem>>, %arg3: memref<2x32x32xf32, #tpu.memory_space<vmem>>, %arg4: memref<3x8x32xf32, #tpu.memory_space<vmem>>) attributes {dimension_semantics = [#tpu.dimension_semantics<parallel>], iteration_bounds = array<i64: 2>, scalar_prefetch = 0 : i64, scratch_operands = 0 : i64, tpu.core_type = #tpu.core_type<tc>, window_params = [{transform_indices = @transform_0, window_bounds = array<i64: 3, 8, 8>}, {transform_indices = @transform_1, window_bounds = array<i64: 3, 8, 32>}, {pipeline_mode = #tpu.pipeline_mode<synchronous>, transform_indices = @transform_2, window_bounds = array<i64: 2, 32, 32>}, {transform_indices = @transform_3, window_bounds = array<i64: 3, 8, 32>}]} {
    %c0 = arith.constant 0 : index
    %c0_0 = arith.constant 0 : index
    %c0_1 = arith.constant 0 : index
    %0 = vector.load %arg1[%c0, %c0_0, %c0_1] : memref<3x8x8xf32, #tpu.memory_space<vmem>>, vector<3x8x8xf32>
    %1 = vector.extract_strided_slice %0 {offsets = [0, 0, 0], sizes = [3, 8, 1], strides = [1, 1, 1]} : vector<3x8x8xf32> to vector<3x8x1xf32>
    %cst = arith.constant dense<0.000000e+00> : vector<3x1xf32>
    %2 = vector.multi_reduction <add>, %1, %cst [1] : vector<3x8x1xf32> to vector<3x1xf32>
    %3 = vector.shape_cast %2 : vector<3x1xf32> to vector<3x1x1xf32>
    %4 = vector.extract_strided_slice %0 {offsets = [0, 0, 1], sizes = [3, 8, 1], strides = [1, 1, 1]} : vector<3x8x8xf32> to vector<3x8x1xf32>
    %cst_2 = arith.constant dense<0.000000e+00> : vector<3x1xf32>
    %5 = vector.multi_reduction <add>, %4, %cst_2 [1] : vector<3x8x1xf32> to vector<3x1xf32>
    %6 = vector.shape_cast %5 : vector<3x1xf32> to vector<3x1x1xf32>
    %7 = vector.extract_strided_slice %0 {offsets = [0, 0, 2], sizes = [3, 8, 1], strides = [1, 1, 1]} : vector<3x8x8xf32> to vector<3x8x1xf32>
    %cst_3 = arith.constant dense<0.000000e+00> : vector<3x1xf32>
    %8 = vector.multi_reduction <add>, %7, %cst_3 [1] : vector<3x8x1xf32> to vector<3x1xf32>
    %9 = vector.shape_cast %8 : vector<3x1xf32> to vector<3x1x1xf32>
    %10 = vector.extract_strided_slice %0 {offsets = [0, 0, 3], sizes = [3, 8, 1], strides = [1, 1, 1]} : vector<3x8x8xf32> to vector<3x8x1xf32>
    %cst_4 = arith.constant dense<0.000000e+00> : vector<3x1xf32>
    %11 = vector.multi_reduction <add>, %10, %cst_4 [1] : vector<3x8x1xf32> to vector<3x1xf32>
    %12 = vector.shape_cast %11 : vector<3x1xf32> to vector<3x1x1xf32>
    %13 = vector.extract_strided_slice %0 {offsets = [0, 0, 4], sizes = [3, 8, 1], strides = [1, 1, 1]} : vector<3x8x8xf32> to vector<3x8x1xf32>
    %cst_5 = arith.constant dense<0.000000e+00> : vector<3x1xf32>
    %14 = vector.multi_reduction <add>, %13, %cst_5 [1] : vector<3x8x1xf32> to vector<3x1xf32>
    %15 = vector.shape_cast %14 : vector<3x1xf32> to vector<3x1x1xf32>
    %16 = vector.extract_strided_slice %0 {offsets = [0, 0, 5], sizes = [3, 8, 1], strides = [1, 1, 1]} : vector<3x8x8xf32> to vector<3x8x1xf32>
    %cst_6 = arith.constant dense<0.000000e+00> : vector<3x1xf32>
    %17 = vector.multi_reduction <add>, %16, %cst_6 [1] : vector<3x8x1xf32> to vector<3x1xf32>
    %18 = vector.shape_cast %17 : vector<3x1xf32> to vector<3x1x1xf32>
    %19 = vector.extract_strided_slice %0 {offsets = [0, 0, 6], sizes = [3, 8, 1], strides = [1, 1, 1]} : vector<3x8x8xf32> to vector<3x8x1xf32>
    %cst_7 = arith.constant dense<0.000000e+00> : vector<3x1xf32>
    %20 = vector.multi_reduction <add>, %19, %cst_7 [1] : vector<3x8x1xf32> to vector<3x1xf32>
    %21 = vector.shape_cast %20 : vector<3x1xf32> to vector<3x1x1xf32>
    %22 = vector.extract_strided_slice %0 {offsets = [0, 0, 7], sizes = [3, 8, 1], strides = [1, 1, 1]} : vector<3x8x8xf32> to vector<3x8x1xf32>
    %cst_8 = arith.constant dense<0.000000e+00> : vector<3x1xf32>
    %23 = vector.multi_reduction <add>, %22, %cst_8 [1] : vector<3x8x1xf32> to vector<3x1xf32>
    %24 = vector.shape_cast %23 : vector<3x1xf32> to vector<3x1x1xf32>
    %25 = tpu.concatenate %3, %6, %9, %12, %15, %18, %21, %24 in 1 : vector<3x1x1xf32>, vector<3x1x1xf32>, vector<3x1x1xf32>, vector<3x1x1xf32>, vector<3x1x1xf32>, vector<3x1x1xf32>, vector<3x1x1xf32>, vector<3x1x1xf32> -> vector<3x8x1xf32>
    %cst_9 = arith.constant 1.000000e+00 : f32
    %26 = vector.broadcast %cst_9 : f32 to vector<3x8x1xf32>
    %27 = arith.addf %25, %26 : vector<3x8x1xf32>
    %28 = math.rsqrt %27 : vector<3x8x1xf32>
    %c0_10 = arith.constant 0 : index
    %c0_11 = arith.constant 0 : index
    %c0_12 = arith.constant 0 : index
    %29 = vector.load %arg2[%c0_10, %c0_11, %c0_12] : memref<3x8x32xf32, #tpu.memory_space<vmem>>, vector<3x8x32xf32>
    %30 = vector.broadcast %28 : vector<3x8x1xf32> to vector<3x8x32xf32>
    %31 = arith.mulf %30, %29 : vector<3x8x32xf32>
    %32 = vector.extract_strided_slice %0 {offsets = [0, 0, 0], sizes = [3, 8, 1], strides = [1, 1, 1]} : vector<3x8x8xf32> to vector<3x8x1xf32>
    %33 = vector.broadcast %32 : vector<3x8x1xf32> to vector<3x8x32xf32>
    %34 = arith.mulf %33, %31 : vector<3x8x32xf32>
    %cst_13 = arith.constant dense<0.000000e+00> : vector<3x32xf32>
    %35 = vector.multi_reduction <add>, %34, %cst_13 [1] : vector<3x8x32xf32> to vector<3x32xf32>
    %36 = vector.shape_cast %35 : vector<3x32xf32> to vector<3x1x32xf32>
    %37 = vector.extract_strided_slice %0 {offsets = [0, 0, 1], sizes = [3, 8, 1], strides = [1, 1, 1]} : vector<3x8x8xf32> to vector<3x8x1xf32>
    %38 = vector.broadcast %37 : vector<3x8x1xf32> to vector<3x8x32xf32>
    %39 = arith.mulf %38, %31 : vector<3x8x32xf32>
    %cst_14 = arith.constant dense<0.000000e+00> : vector<3x32xf32>
    %40 = vector.multi_reduction <add>, %39, %cst_14 [1] : vector<3x8x32xf32> to vector<3x32xf32>
    %41 = vector.shape_cast %40 : vector<3x32xf32> to vector<3x1x32xf32>
    %42 = vector.extract_strided_slice %0 {offsets = [0, 0, 2], sizes = [3, 8, 1], strides = [1, 1, 1]} : vector<3x8x8xf32> to vector<3x8x1xf32>
    %43 = vector.broadcast %42 : vector<3x8x1xf32> to vector<3x8x32xf32>
    %44 = arith.mulf %43, %31 : vector<3x8x32xf32>
    %cst_15 = arith.constant dense<0.000000e+00> : vector<3x32xf32>
    %45 = vector.multi_reduction <add>, %44, %cst_15 [1] : vector<3x8x32xf32> to vector<3x32xf32>
    %46 = vector.shape_cast %45 : vector<3x32xf32> to vector<3x1x32xf32>
    %47 = vector.extract_strided_slice %0 {offsets = [0, 0, 3], sizes = [3, 8, 1], strides = [1, 1, 1]} : vector<3x8x8xf32> to vector<3x8x1xf32>
    %48 = vector.broadcast %47 : vector<3x8x1xf32> to vector<3x8x32xf32>
    %49 = arith.mulf %48, %31 : vector<3x8x32xf32>
    %cst_16 = arith.constant dense<0.000000e+00> : vector<3x32xf32>
    %50 = vector.multi_reduction <add>, %49, %cst_16 [1] : vector<3x8x32xf32> to vector<3x32xf32>
    %51 = vector.shape_cast %50 : vector<3x32xf32> to vector<3x1x32xf32>
    %52 = vector.extract_strided_slice %0 {offsets = [0, 0, 4], sizes = [3, 8, 1], strides = [1, 1, 1]} : vector<3x8x8xf32> to vector<3x8x1xf32>
    %53 = vector.broadcast %52 : vector<3x8x1xf32> to vector<3x8x32xf32>
    %54 = arith.mulf %53, %31 : vector<3x8x32xf32>
    %cst_17 = arith.constant dense<0.000000e+00> : vector<3x32xf32>
    %55 = vector.multi_reduction <add>, %54, %cst_17 [1] : vector<3x8x32xf32> to vector<3x32xf32>
    %56 = vector.shape_cast %55 : vector<3x32xf32> to vector<3x1x32xf32>
    %57 = vector.extract_strided_slice %0 {offsets = [0, 0, 5], sizes = [3, 8, 1], strides = [1, 1, 1]} : vector<3x8x8xf32> to vector<3x8x1xf32>
    %58 = vector.broadcast %57 : vector<3x8x1xf32> to vector<3x8x32xf32>
    %59 = arith.mulf %58, %31 : vector<3x8x32xf32>
    %cst_18 = arith.constant dense<0.000000e+00> : vector<3x32xf32>
    %60 = vector.multi_reduction <add>, %59, %cst_18 [1] : vector<3x8x32xf32> to vector<3x32xf32>
    %61 = vector.shape_cast %60 : vector<3x32xf32> to vector<3x1x32xf32>
    %62 = vector.extract_strided_slice %0 {offsets = [0, 0, 6], sizes = [3, 8, 1], strides = [1, 1, 1]} : vector<3x8x8xf32> to vector<3x8x1xf32>
    %63 = vector.broadcast %62 : vector<3x8x1xf32> to vector<3x8x32xf32>
    %64 = arith.mulf %63, %31 : vector<3x8x32xf32>
    %cst_19 = arith.constant dense<0.000000e+00> : vector<3x32xf32>
    %65 = vector.multi_reduction <add>, %64, %cst_19 [1] : vector<3x8x32xf32> to vector<3x32xf32>
    %66 = vector.shape_cast %65 : vector<3x32xf32> to vector<3x1x32xf32>
    %67 = vector.extract_strided_slice %0 {offsets = [0, 0, 7], sizes = [3, 8, 1], strides = [1, 1, 1]} : vector<3x8x8xf32> to vector<3x8x1xf32>
    %68 = vector.broadcast %67 : vector<3x8x1xf32> to vector<3x8x32xf32>
    %69 = arith.mulf %68, %31 : vector<3x8x32xf32>
    %cst_20 = arith.constant dense<0.000000e+00> : vector<3x32xf32>
    %70 = vector.multi_reduction <add>, %69, %cst_20 [1] : vector<3x8x32xf32> to vector<3x32xf32>
    %71 = vector.shape_cast %70 : vector<3x32xf32> to vector<3x1x32xf32>
    %72 = tpu.concatenate %36, %41, %46, %51, %56, %61, %66, %71 in 1 : vector<3x1x32xf32>, vector<3x1x32xf32>, vector<3x1x32xf32>, vector<3x1x32xf32>, vector<3x1x32xf32>, vector<3x1x32xf32>, vector<3x1x32xf32>, vector<3x1x32xf32> -> vector<3x8x32xf32>
    %73 = arith.addf %72, %31 : vector<3x8x32xf32>
    %74 = vector.broadcast %28 : vector<3x8x1xf32> to vector<3x8x32xf32>
    %75 = arith.mulf %74, %73 : vector<3x8x32xf32>
    %76 = vector.shape_cast %75 : vector<3x8x32xf32> to vector<24x32xf32>
    %c0_21 = arith.constant 0 : index
    %c0_22 = arith.constant 0 : index
    %c0_23 = arith.constant 0 : index
    %77 = vector.load %arg3[%c0_21, %c0_22, %c0_23] : memref<2x32x32xf32, #tpu.memory_space<vmem>>, vector<1x32x32xf32>
    %78 = vector.shape_cast %77 : vector<1x32x32xf32> to vector<32x32xf32>
    %cst_24 = arith.constant dense<0.000000e+00> : vector<24x32xf32>
    %79 = tpu.matmul %76, %78, %cst_24 {dimension_numbers = #tpu.dot_dimension_numbers<[1], [0], [0], [1], [0, 0, 1, 1], [], []>} : vector<24x32xf32>, vector<32x32xf32>, vector<24x32xf32> -> vector<24x32xf32>
    %cst_25 = arith.constant 0.000000e+00 : f32
    %80 = vector.broadcast %cst_25 : f32 to vector<24x32xf32>
    %81 = arith.maximumf %79, %80 : vector<24x32xf32>
    %82 = vector.shape_cast %81 : vector<24x32xf32> to vector<3x8x32xf32>
    %83 = vector.broadcast %28 : vector<3x8x1xf32> to vector<3x8x32xf32>
    %84 = arith.mulf %83, %82 : vector<3x8x32xf32>
    %85 = vector.extract_strided_slice %0 {offsets = [0, 0, 0], sizes = [3, 8, 1], strides = [1, 1, 1]} : vector<3x8x8xf32> to vector<3x8x1xf32>
    %86 = vector.broadcast %85 : vector<3x8x1xf32> to vector<3x8x32xf32>
    %87 = arith.mulf %86, %84 : vector<3x8x32xf32>
    %cst_26 = arith.constant dense<0.000000e+00> : vector<3x32xf32>
    %88 = vector.multi_reduction <add>, %87, %cst_26 [1] : vector<3x8x32xf32> to vector<3x32xf32>
    %89 = vector.shape_cast %88 : vector<3x32xf32> to vector<3x1x32xf32>
    %90 = vector.extract_strided_slice %0 {offsets = [0, 0, 1], sizes = [3, 8, 1], strides = [1, 1, 1]} : vector<3x8x8xf32> to vector<3x8x1xf32>
    %91 = vector.broadcast %90 : vector<3x8x1xf32> to vector<3x8x32xf32>
    %92 = arith.mulf %91, %84 : vector<3x8x32xf32>
    %cst_27 = arith.constant dense<0.000000e+00> : vector<3x32xf32>
    %93 = vector.multi_reduction <add>, %92, %cst_27 [1] : vector<3x8x32xf32> to vector<3x32xf32>
    %94 = vector.shape_cast %93 : vector<3x32xf32> to vector<3x1x32xf32>
    %95 = vector.extract_strided_slice %0 {offsets = [0, 0, 2], sizes = [3, 8, 1], strides = [1, 1, 1]} : vector<3x8x8xf32> to vector<3x8x1xf32>
    %96 = vector.broadcast %95 : vector<3x8x1xf32> to vector<3x8x32xf32>
    %97 = arith.mulf %96, %84 : vector<3x8x32xf32>
    %cst_28 = arith.constant dense<0.000000e+00> : vector<3x32xf32>
    %98 = vector.multi_reduction <add>, %97, %cst_28 [1] : vector<3x8x32xf32> to vector<3x32xf32>
    %99 = vector.shape_cast %98 : vector<3x32xf32> to vector<3x1x32xf32>
    %100 = vector.extract_strided_slice %0 {offsets = [0, 0, 3], sizes = [3, 8, 1], strides = [1, 1, 1]} : vector<3x8x8xf32> to vector<3x8x1xf32>
    %101 = vector.broadcast %100 : vector<3x8x1xf32> to vector<3x8x32xf32>
    %102 = arith.mulf %101, %84 : vector<3x8x32xf32>
    %cst_29 = arith.constant dense<0.000000e+00> : vector<3x32xf32>
    %103 = vector.multi_reduction <add>, %102, %cst_29 [1] : vector<3x8x32xf32> to vector<3x32xf32>
    %104 = vector.shape_cast %103 : vector<3x32xf32> to vector<3x1x32xf32>
    %105 = vector.extract_strided_slice %0 {offsets = [0, 0, 4], sizes = [3, 8, 1], strides = [1, 1, 1]} : vector<3x8x8xf32> to vector<3x8x1xf32>
    %106 = vector.broadcast %105 : vector<3x8x1xf32> to vector<3x8x32xf32>
    %107 = arith.mulf %106, %84 : vector<3x8x32xf32>
    %cst_30 = arith.constant dense<0.000000e+00> : vector<3x32xf32>
    %108 = vector.multi_reduction <add>, %107, %cst_30 [1] : vector<3x8x32xf32> to vector<3x32xf32>
    %109 = vector.shape_cast %108 : vector<3x32xf32> to vector<3x1x32xf32>
    %110 = vector.extract_strided_slice %0 {offsets = [0, 0, 5], sizes = [3, 8, 1], strides = [1, 1, 1]} : vector<3x8x8xf32> to vector<3x8x1xf32>
    %111 = vector.broadcast %110 : vector<3x8x1xf32> to vector<3x8x32xf32>
    %112 = arith.mulf %111, %84 : vector<3x8x32xf32>
    %cst_31 = arith.constant dense<0.000000e+00> : vector<3x32xf32>
    %113 = vector.multi_reduction <add>, %112, %cst_31 [1] : vector<3x8x32xf32> to vector<3x32xf32>
    %114 = vector.shape_cast %113 : vector<3x32xf32> to vector<3x1x32xf32>
    %115 = vector.extract_strided_slice %0 {offsets = [0, 0, 6], sizes = [3, 8, 1], strides = [1, 1, 1]} : vector<3x8x8xf32> to vector<3x8x1xf32>
    %116 = vector.broadcast %115 : vector<3x8x1xf32> to vector<3x8x32xf32>
    %117 = arith.mulf %116, %84 : vector<3x8x32xf32>
    %cst_32 = arith.constant dense<0.000000e+00> : vector<3x32xf32>
    %118 = vector.multi_reduction <add>, %117, %cst_32 [1] : vector<3x8x32xf32> to vector<3x32xf32>
    %119 = vector.shape_cast %118 : vector<3x32xf32> to vector<3x1x32xf32>
    %120 = vector.extract_strided_slice %0 {offsets = [0, 0, 7], sizes = [3, 8, 1], strides = [1, 1, 1]} : vector<3x8x8xf32> to vector<3x8x1xf32>
    %121 = vector.broadcast %120 : vector<3x8x1xf32> to vector<3x8x32xf32>
    %122 = arith.mulf %121, %84 : vector<3x8x32xf32>
    %cst_33 = arith.constant dense<0.000000e+00> : vector<3x32xf32>
    %123 = vector.multi_reduction <add>, %122, %cst_33 [1] : vector<3x8x32xf32> to vector<3x32xf32>
    %124 = vector.shape_cast %123 : vector<3x32xf32> to vector<3x1x32xf32>
    %125 = tpu.concatenate %89, %94, %99, %104, %109, %114, %119, %124 in 1 : vector<3x1x32xf32>, vector<3x1x32xf32>, vector<3x1x32xf32>, vector<3x1x32xf32>, vector<3x1x32xf32>, vector<3x1x32xf32>, vector<3x1x32xf32>, vector<3x1x32xf32> -> vector<3x8x32xf32>
    %126 = arith.addf %125, %84 : vector<3x8x32xf32>
    %127 = vector.broadcast %28 : vector<3x8x1xf32> to vector<3x8x32xf32>
    %128 = arith.mulf %127, %126 : vector<3x8x32xf32>
    %129 = vector.shape_cast %128 : vector<3x8x32xf32> to vector<24x32xf32>
    %c1 = arith.constant 1 : index
    %c0_34 = arith.constant 0 : index
    %c0_35 = arith.constant 0 : index
    %130 = vector.load %arg3[%c1, %c0_34, %c0_35] : memref<2x32x32xf32, #tpu.memory_space<vmem>>, vector<1x32x32xf32>
    %131 = vector.shape_cast %130 : vector<1x32x32xf32> to vector<32x32xf32>
    %cst_36 = arith.constant dense<0.000000e+00> : vector<24x32xf32>
    %132 = tpu.matmul %129, %131, %cst_36 {dimension_numbers = #tpu.dot_dimension_numbers<[1], [0], [0], [1], [0, 0, 1, 1], [], []>} : vector<24x32xf32>, vector<32x32xf32>, vector<24x32xf32> -> vector<24x32xf32>
    %cst_37 = arith.constant 0.000000e+00 : f32
    %133 = vector.broadcast %cst_37 : f32 to vector<24x32xf32>
    %134 = arith.maximumf %132, %133 : vector<24x32xf32>
    %135 = vector.shape_cast %134 : vector<24x32xf32> to vector<3x8x32xf32>
    %c0_38 = arith.constant 0 : index
    %c0_39 = arith.constant 0 : index
    %c0_40 = arith.constant 0 : index
    %136 = vector.load %arg4[%c0_38, %c0_39, %c0_40] : memref<3x8x32xf32, #tpu.memory_space<vmem>>, vector<3x8x32xf32>
    tpu.vector_store %arg4[%c0_38, %c0_39, %c0_40], %135 {strides = array<i32>} : memref<3x8x32xf32, #tpu.memory_space<vmem>>, vector<3x8x32xf32>,
    return
  }
  func.func @transform_0(%arg0: i32) -> (i32, i32, i32) {
    %c0_i32 = arith.constant 0 : i32
    %c0_i32_0 = arith.constant 0 : i32
    %c0_i32_1 = arith.constant 0 : i32
    return %arg0, %c0_i32, %c0_i32_0 : i32, i32, i32
  }
  func.func @transform_1(%arg0: i32) -> (i32, i32, i32) {
    %c0_i32 = arith.constant 0 : i32
    %c0_i32_0 = arith.constant 0 : i32
    %c0_i32_1 = arith.constant 0 : i32
    return %arg0, %c0_i32, %c0_i32_0 : i32, i32, i32
  }
  func.func @transform_2(%arg0: i32) -> (i32, i32, i32) {
    %c0_i32 = arith.constant 0 : i32
    %c0_i32_0 = arith.constant 0 : i32
    %c0_i32_1 = arith.constant 0 : i32
    %c0_i32_2 = arith.constant 0 : i32
    return %c0_i32, %c0_i32_0, %c0_i32_1 : i32, i32, i32
  }
  func.func @transform_3(%arg0: i32) -> (i32, i32, i32) {
    %c0_i32 = arith.constant 0 : i32
    %c0_i32_0 = arith.constant 0 : i32
    %c0_i32_1 = arith.constant 0 : i32
    return %arg0, %c0_i32, %c0_i32_0 : i32, i32, i32
  }
}

</mosaic_0001>

<bundles_post_ra>
// kernel: tpu_custom_call.1
= control target key start
LH: loop header
LB: loop body
LE: loop exit
PB: predicated region body
PF: predicated region fallthrough
CT: control target
= control target key end

     0   :  { %8 = vsyncpa [#allocation3], 0  ;;  %s2565_s0 = inlined_call_operand.hbm [shape: f32[6,8,8], index: 0, kind: input, shape index: {}]   ;;  %s2566_s1 = inlined_call_operand.hbm [shape: f32[6,8,32], index: 1, kind: input, shape index: {}]   ;;  %s2567_s2 = inlined_call_operand.hbm [shape: f32[2,32,32], index: 2, kind: input, shape index: {}]   ;;  %s2568_s3 = inlined_call_operand.hbm [shape: f32[6,8,32], index: 3, kind: output, shape index: {}]  }
   0x1   :  { %10 = vsyncpa [#allocation3 + $0x1], 0 }
   0x2   :  { %11 = vsyncpa [#allocation6], 0 }
   0x3   :  { %13 = vsyncpa [#allocation6 + $0x1], 0 }
   0x4   :  { %14 = vsyncpa [#allocation4], 0 }
   0x5   :  { %16 = vsyncpa [#allocation4 + $0x1], 0  ;;  %s1827_s12 = smov 0   ;;  %s1829_s13 = smov 0  }
   0x6   :  { %s1831_s14 = smov 0   ;;  %s1833_s15 = smov 0  }
   0x7 LB: > { %s1848_s16 = sadd.s32 4294967295, %s1779_s15   ;;  %s1420_s17 = sadd.s32 4294967294, %s1779_s15   ;;  %s1779_s15 = sphi %s1833_s15, %s2609_s15   ;;  %s1775_s14 = sphi %s1831_s14, %s2608_s14   ;;  %s1771_s13 = sphi %s1829_s13, %s2607_s13   ;;  %s1767_s12 = sphi %s1827_s12, %s2606_s12  }
   0x8   : > { %p42_p0 = scmp.ne.s32.totalorder %s1771_s13, %s1767_s12  ;;  %p2569_p1 = scmp.eq.s32.totalorder %s1848_s16, 0 }
   0x9   : > { %p119_p3 = scmp.eq.s32.totalorder %s1420_s17, 1  ;;  %p1421_p5 = scmp.ge.s32.totalorder %s1779_s15, 1 }
   0xa   : > { %p1857_p4 = por %p2569_p1, %p42_p0  ;;  %p126_p7 = scmp.lt.s32.totalorder %s1779_s15, 3 }
   0xb   : > { %p1862_p6 = por %p119_p3, %p42_p0  ;;  %s1781_s21 = smov [#allocation7]  }
   0xc   : > { %s2579_s18 = scalar_select %p1857_p4, 1, 0 }
   0xd   : > { %s2580_s19 = scalar_select %p1862_p6, 1, 0 }
   0xe   : > { %p1867_p8 = pnand %p1421_p5, %p126_p7  ;;  %s138_s22 = sshll.u32 %s1781_s21, 4  ;;  %s1871_s22 = int_to_ptr.vmem [resolvable:$true] %s138_s22 }
   0xf   : > { %s1883_s24 = sadd.s32 1, %s1779_s15   ;;  %s29_s25 = sadd.s32 1, %s1775_s14 }
  0x10   : > { %s2581_s20 = scalar_select %p1867_p8, 1, 0 }
  0x11   : > { %p1513_p9 = pneg %p1867_p8  ;;  %s26_s26 = ssub.s32 %s1779_s15, %s1883_s24 }
  0x12   : > { %s1617_s29 = scalar_lea.hbm %s2567_s2, 1024 }
  0x13   : > { %p1878_p11 = pnand %p1513_p9, %p2569_p1  ;;  %p1618_p12 = scmp.ne.s32.totalorder %s2567_s2, %s1617_s29 }
  0x14   : > { %p1624_p5 = scmp.lt.u32.totalorder %s1617_s29, %s2567_s2 }
  0x15   : > { %p1619_p13 = pneg %p1878_p11 }
  0x17   : > { %p1620_p0 = pnand %p1619_p13, %p1618_p12 }
  0x19   : > { %p1621_p3 = pneg %p1620_p0 }
  0x1b   : > { %p1626_p7 = pnand %p1624_p5, %p1621_p3 }
  0x1d   : > { %1629 = shalt.err (!%p1626_p7)
}
  0x1e   : > { %s1630_s7 = scalar_lea.vmem %s1871_s22, 1024  ;;  %p1638_p2 = scmp.lt.s32.totalorder %s1871_s22, %s1871_s22 }
  0x1f   : > { %p1631_p9 = scmp.ne.s32.totalorder %s1871_s22, %s1630_s7  ;;  %p1639_p6 = scmp.lt.s32.totalorder %s1630_s7, %s1630_s7 }
  0x21   : > { %p1633_p10 = pnand %p1631_p9, %p1619_p13  ;;  %p1640_p4 = por %p1639_p6, %p1638_p2 }
  0x23   : > { %p1634_p1 = pneg %p1633_p10 }
  0x25   : > { %p1641_p8 = pnand %p1640_p4, %p1634_p1 }
  0x27   : > { %1644 = shalt.err (!%p1641_p8)
}
  0x28   : > { %s1782_s8 = smov 128   ;;  %s1783_s9 = smov 8  }
  0x29   : > { %1516 = dma.hbm_to_vmem [thread:$0]  (!%p1878_p11), %s2567_s2, 1024, %s1871_s22, [#allocation6], %s1782_s8, %s1782_s8, %s1783_s9  }
  0x2a   : > { %p27_p1 = scmp.eq.s32.totalorder %s26_s26, 0  ;;  %p36_p2 = scmp.ne.s32.totalorder %s1775_s14, %s1771_s13 }
  0x2b   : > { %p37_p4 = scmp.eq.s32.totalorder %s1779_s15, 0  ;;  %p1529_p6 = scmp.lt.s32.totalorder %s1779_s15, 2 }
  0x2c   : > { %s1917_s17 = scalar_select %p27_p1, %s1775_s14, %s29_s25  }
  0x2d   : > { %p38_p8 = por %p37_p4, %p36_p2  ;;  %p2583_p10 = scmp.eq.s32.totalorder %s1848_s16, 1 }
  0x2e   : > { %s152_s23 = sand.u32 1, %s1775_s14   ;;  %s1437_s27 = smul.u32 384, %s1779_s15 }
  0x2f   : > { %p1921_p12 = por %p2583_p10, %p36_p2  ;;  %s1927_s28 = smul.u32 24, %s152_s23 }
  0x30   : > { %s1934_s22 = scalar_lea.hbm %s2565_s0, %s1437_s27  ;;  %p1936_p11 = pnand %p1529_p6, %p38_p8 }
  0x31   : > { %s156_s4 = scalar_lea.vmem [#allocation2], %s1927_s28  ;;  %s1944_s6 = scalar_lea.sflag [#allocation3], %s152_s23 }
  0x32   : > { %s163_s5 = sshll.u32 %s156_s4, 4  ;;  %s1645_s7 = scalar_lea.hbm %s1934_s22, 384  ;;  %s1942_s5 = int_to_ptr.vmem [resolvable:$true] %s163_s5 }
  0x33   : > { %p1646_p13 = scmp.ne.s32.totalorder %s1934_s22, %s1645_s7  ;;  %p1647_p0 = pneg %p1936_p11 }
  0x34   : > { %s1650_s29 = scalar_lea.hbm %s2565_s0, 768  ;;  %p1651_p7 = scmp.lt.u32.totalorder %s1934_s22, %s2565_s0 }
  0x35   : > { %p1648_p3 = pnand %p1647_p0, %p1646_p13  ;;  %p1652_p9 = scmp.lt.u32.totalorder %s1650_s29, %s1645_s7 }
  0x36   : > { %p1654_p2 = scmp.lt.u32.totalorder %s1645_s7, %s1934_s22 }
  0x37   : > { %p1649_p5 = pneg %p1648_p3  ;;  %p1653_p1 = por %p1652_p9, %p1651_p7 }
  0x39   : > { %p1655_p4 = por %p1654_p2, %p1653_p1 }
  0x3b   : > { %p1656_p6 = pnand %p1655_p4, %p1649_p5 }
  0x3d   : > { %1659 = shalt.err (!%p1656_p6)
}
  0x3e   : > { %s1660_s23 = scalar_lea.vmem %s1942_s5, 384  ;;  %s1784_s4 = smov [#allocation2]  }
  0x3f   : > { %p1661_p8 = scmp.ne.s32.totalorder %s1942_s5, %s1660_s23  ;;  %s1665_s10 = sshll.u32 %s1784_s4, 4  ;;  %s1666_s10 = int_to_ptr.vmem [resolvable:$false] %s1665_s10 }
  0x40   : > { %s1667_s26 = scalar_lea.vmem %s1666_s10, 768  ;;  %p1668_p3 = scmp.lt.s32.totalorder %s1942_s5, %s1666_s10 }
  0x41   : > { %p1663_p10 = pnand %p1661_p8, %p1647_p0  ;;  %p1669_p7 = scmp.lt.s32.totalorder %s1667_s26, %s1660_s23 }
  0x43   : > { %p1664_p13 = pneg %p1663_p10  ;;  %p1670_p9 = por %p1669_p7, %p1668_p3 }
  0x45   : > { %p1671_p1 = pnand %p1670_p9, %p1664_p13 }
  0x47   : > { %1674 = shalt.err (!%p1671_p1)
}
  0x48   : > { %1520 = dma.hbm_to_vmem [thread:$0]  (!%p1936_p11), %s1934_s22, 384, %s1942_s5, %s1944_s6, %s1782_s8, %s1782_s8, %s1783_s9  }
  0x49   : > { %s1980_s29 = scalar_lea.hbm %s2566_s1, %s1437_s27  ;;  %s177_s30 = scalar_lea.vmem [#allocation5], %s1927_s28 }
  0x4a   : > { %s184_s23 = sshll.u32 %s177_s30, 4  ;;  %s2586_s4 = sand.u32 1, %s1779_s15   ;;  %s1983_s23 = int_to_ptr.vmem [resolvable:$true] %s184_s23 }
  0x4b   : > { %s1987_s10 = scalar_lea.sflag [#allocation6], %s2586_s4  ;;  %s1675_s26 = scalar_lea.hbm %s1980_s29, 384 }
  0x4c   : > { %p1676_p5 = scmp.ne.s32.totalorder %s1980_s29, %s1675_s26  ;;  %s1680_s5 = scalar_lea.hbm %s2566_s1, 768 }
  0x4d   : > { %p1681_p6 = scmp.lt.u32.totalorder %s1980_s29, %s2566_s1  ;;  %p1682_p8 = scmp.lt.u32.totalorder %s1680_s5, %s1675_s26 }
  0x4e   : > { %p1678_p2 = pnand %p1676_p5, %p1647_p0  ;;  %p1684_p13 = scmp.lt.u32.totalorder %s1675_s26, %s1980_s29 }
  0x4f   : > { %p1683_p10 = por %p1682_p8, %p1681_p6 }
  0x50   : > { %p1679_p4 = pneg %p1678_p2 }
  0x51   : > { %p1685_p3 = por %p1684_p13, %p1683_p10 }
  0x53   : > { %p1686_p7 = pnand %p1685_p3, %p1679_p4 }
  0x55   : > { %1689 = shalt.err (!%p1686_p7)
}
  0x56   : > { %s1690_s28 = scalar_lea.vmem %s1983_s23, 384  ;;  %s1785_s11 = smov [#allocation5]  }
  0x57   : > { %p1691_p9 = scmp.ne.s32.totalorder %s1983_s23, %s1690_s28  ;;  %s1695_s30 = sshll.u32 %s1785_s11, 4  ;;  %s1696_s30 = int_to_ptr.vmem [resolvable:$false] %s1695_s30 }
  0x58   : > { %s1697_s4 = scalar_lea.vmem %s1696_s30, 768  ;;  %p1698_p2 = scmp.lt.s32.totalorder %s1983_s23, %s1696_s30 }
  0x59   : > { %p1693_p1 = pnand %p1691_p9, %p1647_p0  ;;  %p1699_p6 = scmp.lt.s32.totalorder %s1697_s4, %s1690_s28 }
  0x5b   : > { %p1694_p5 = pneg %p1693_p1  ;;  %p1700_p8 = por %p1699_p6, %p1698_p2 }
  0x5d   : > { %p1701_p10 = pnand %p1700_p8, %p1694_p5 }
  0x5f   : > { %1704 = shalt.err (!%p1701_p10)
}
  0x60   : > { %1523 = dma.hbm_to_vmem [thread:$0]  (!%p1936_p11), %s1980_s29, 384, %s1983_s23, %s1987_s10, %s1782_s8, %s1782_s8, %s1783_s9  }
  0x61   : > { %p2587_p0 = scmp.ne.s32.totalorder %s2581_s20, 0 }
  0x63   : > { %196 = sbr.rel (%p2587_p0) target bundleno = 976 (0x3d0), region = 32 }
  0x6a   : > { %s2019_s26 = sand.u32 1, %s1771_s13   ;;  %p2588_p4 = scmp.ne.s32.totalorder %s2579_s18, 0 }
  0x6b   : > { %s2022_s22 = smul.u32 24, %s2019_s26  ;;  %s199_s25 = scalar_lea.sflag [#allocation3], %s2019_s26 }
  0x6d   : > { %s2026_s27 = scalar_lea.vmem [#allocation2], %s2022_s22 }
  0x6e   : > { %1750 = dma.done.wait (%p2588_p4), %s199_s25, 384  }
  0x6f   : > { %1752 = vsyncadd (%p2588_p4), %s199_s25, 4294966912  ;;  %s207_s20 = sand.u32 1, %s1848_s16   ;;  %s2034_s9 = scalar_lea.vmem [#allocation5], %s2022_s22 }
  0x70   : > { %s208_s8 = scalar_lea.sflag [#allocation6], %s207_s20 }
  0x71   : > { %1754 = dma.done.wait (%p2588_p4), %s208_s8, 384  }
  0x72   : > { %1756 = vsyncadd (%p2588_p4), %s208_s8, 4294966912  ;;  %p2589_p11 = scmp.eq.s32.totalorder %s1848_s16, 0 }
  0x74   : > { %1758 = dma.done.wait (%p2589_p11), [#allocation6], 1024   ;;  %p2590_p13 = pmov %p2589_p11 }
  0x75   : > { %v1786_v0 = vmov 1   ;;  %vm315_vm0 = vcmask 31768   ;;  %vm271_vm1 = vcmask 15368   ;;  %vm337_vm2 = vcmask 39968   ;;  %v2046_v1 = vld [vmem:[%s2026_s27] sm:$0xff]  ;;  %v2049_v2 = vld [vmem:[%s2026_s27 + $0x8] sm:$0xff] }
  0x76   : > { %1760 = vsyncadd (%p2590_p13), [#allocation6], 4294966272  ;;  %1587 = vset.pattern.permute.xlu1 %v1786_v0  ;;  %vm293_vm3 = vcmask 23568   ;;  %vm359_vm4 = vcmask 48168   ;;  %vm381_vm5 = vcmask 56368   ;;  %v316_v3 = vsel %vm315_vm0, %v2046_v1, 0.0 }
  0x77   : > { %v272_v4 = vsel %vm271_vm1, %v2046_v1, 0.0  ;;  %v338_v5 = vsel %vm337_vm2, %v2046_v1, 0.0  ;;  %v294_v6 = vsel %vm293_vm3, %v2046_v1, 0.0  ;;  %v317_v7 = vrot.slane %v316_v3, 4  ;;  %v2068_v47 = vld [vmem:[%s2026_s27 + $0x10] sm:$0xff]  ;;  %s1787_s18 = smov 125  }
  0x78   : > { %v273_v8 = vrot.slane %v272_v4, 4  ;;  %v339_v9 = vrot.slane %v338_v5, 4  ;;  %v295_v10 = vrot.slane %v294_v6, 4  ;;  %v360_v11 = vsel %vm359_vm4, %v2046_v1, 0.0  ;;  %s1788_s29 = smov 127   ;;  %s1789_s23 = smov 124  }
  0x79   : > { %v279_v12 = vsel %vm271_vm1, %v2049_v2, 0.0  ;;  %v382_v13 = vsel %vm381_vm5, %v2046_v1, 0.0  ;;  %v301_v14 = vsel %vm293_vm3, %v2049_v2, 0.0  ;;  %vm403_vm6 = vcmask 64568   ;;  %s1790_s10 = smov 126   ;;  %s1791_s5 = smov 123  }
  0x7a   : > { %v318_v15 = vadd.f32 %v317_v7, %v316_v3  ;;  %v274_v16 = vadd.f32 %v273_v8, %v272_v4  ;;  %v340_v17 = vadd.f32 %v339_v9, %v338_v5  ;;  %v296_v18 = vadd.f32 %v295_v10, %v294_v6  ;;  %s1792_s6 = smov 122   ;;  %s1793_s7 = smov 121  }
  0x7b   : > { %v361_v19 = vrot.slane %v360_v11, 4  ;;  %v280_v20 = vrot.slane %v279_v12, 4  ;;  %v383_v21 = vrot.slane %v382_v13, 4  ;;  %v302_v22 = vrot.slane %v301_v14, 4  ;;  %s242_s28 = scalar_lea.vmem [#allocation8], %s2022_s22  ;;  %s1439_s30 = smul.u32 384, %s1848_s16 }
  0x7c   : > { %v319_v23 = vrot.slane %v318_v15, 2  ;;  %v275_v24 = vrot.slane %v274_v16, 2  ;;  %v341_v25 = vrot.slane %v340_v17, 2  ;;  %v297_v26 = vrot.slane %v296_v18, 2  ;;  %s1315_s11 = sshll.u32 %s242_s28, 4  ;;  %s1302_s27 = scalar_lea.sflag [#allocation4], %s2019_s26  ;;  %s2515_s11 = int_to_ptr.vmem [resolvable:$true] %s1315_s11 }
  0x7d   : > { %v362_v27 = vadd.f32 %v361_v19, %v360_v11  ;;  %v281_v28 = vadd.f32 %v280_v20, %v279_v12  ;;  %v384_v29 = vadd.f32 %v383_v21, %v382_v13  ;;  %v303_v30 = vadd.f32 %v302_v22, %v301_v14  ;;  %s2520_s25 = scalar_lea.hbm %s2568_s3, %s1439_s30  ;;  %s1705_s20 = scalar_lea.vmem %s2515_s11, 384 }
  0x7e   : > { %v320_v31 = vadd.f32 %v319_v23, %v318_v15  ;;  %v276_v32 = vadd.f32 %v275_v24, %v274_v16  ;;  %v342_v33 = vadd.f32 %v341_v25, %v340_v17  ;;  %v298_v34 = vadd.f32 %v297_v26, %v296_v18  ;;  %p1706_p3 = scmp.ne.s32.totalorder %s2515_s11, %s1705_s20  ;;  %s1804_s16 = smov [#allocation8]  }
  0x7f   : > { %v363_v35 = vrot.slane %v362_v27, 2  ;;  %v282_v36 = vrot.slane %v281_v28, 2  ;;  %v385_v37 = vrot.slane %v384_v29, 2  ;;  %v304_v38 = vrot.slane %v303_v30, 2  ;;  %s1709_s8 = sshll.u32 %s1804_s16, 4  ;;  %s1710_s8 = int_to_ptr.vmem [resolvable:$false] %s1709_s8 }
  0x80   : > { %v321_v39 = vrot.slane %v320_v31, 1  ;;  %v277_v40 = vrot.slane %v276_v32, 1  ;;  %v343_v41 = vrot.slane %v342_v33, 1  ;;  %v299_v42 = vrot.slane %v298_v34, 1  ;;  %p1707_p7 = pnand %p1706_p3, %p1921_p12  ;;  %p1712_p1 = scmp.lt.s32.totalorder %s2515_s11, %s1710_s8 }
  0x81   : > { %v364_v43 = vadd.f32 %v363_v35, %v362_v27  ;;  %v283_v44 = vadd.f32 %v282_v36, %v281_v28  ;;  %v386_v45 = vadd.f32 %v385_v37, %v384_v29  ;;  %v305_v46 = vadd.f32 %v304_v38, %v303_v30 }
  0x82   : > { %v322_v48 = vadd.f32 %v321_v39, %v320_v31  ;;  %v278_v49 = vadd.f32 %v277_v40, %v276_v32  ;;  %v344_v50 = vadd.f32 %v343_v41, %v342_v33  ;;  %v300_v51 = vadd.f32 %v299_v42, %v298_v34  ;;  %p1708_p9 = pneg %p1707_p7 }
  0x83   : > { %v365_v52 = vrot.slane %v364_v43, 1  ;;  %v284_v53 = vrot.slane %v283_v44, 1  ;;  %v387_v54 = vrot.slane %v386_v45, 1  ;;  %v306_v55 = vrot.slane %v305_v46, 1 }
  0x84   : > { %452 = vrot.lane.b32.xlu1 %v322_v48, %s1787_s18  ;;  %428 = vrot.lane.b32.xlu0 %v278_v49, %s1788_s29  ;;  %v404_v56 = vsel %vm403_vm6, %v2046_v1, 0.0  ;;  %v323_v57 = vsel %vm315_vm0, %v2049_v2, 0.0  ;;  %v286_v58 = vsel %vm271_vm1, %v2068_v47, 0.0  ;;  %v345_v59 = vsel %vm337_vm2, %v2049_v2, 0.0 }
  0x85   : > { %v366_v60 = vadd.f32 %v365_v52, %v364_v43  ;;  %v285_v61 = vadd.f32 %v284_v53, %v283_v44  ;;  %v388_v62 = vadd.f32 %v387_v54, %v386_v45  ;;  %v307_v63 = vadd.f32 %v306_v55, %v305_v46 }
  0x86   : > { %v405_v3 = vrot.slane %v404_v56, 4  ;;  %v324_v4 = vrot.slane %v323_v57, 4  ;;  %v287_v5 = vrot.slane %v286_v58, 4  ;;  %v346_v6 = vrot.slane %v345_v59, 4 }
  0x87   : > { %v308_v7 = vsel %vm293_vm3, %v2068_v47, 0.0  ;;  %v367_v8 = vsel %vm359_vm4, %v2049_v2, 0.0  ;;  %v330_v9 = vsel %vm315_vm0, %v2068_v47, 0.0  ;;  %v389_v10 = vsel %vm381_vm5, %v2049_v2, 0.0 }
  0x88   : > { %464 = vrot.lane.b32.xlu1 %v344_v50, %s1789_s23  ;;  %440 = vrot.lane.b32.xlu0 %v300_v51, %s1790_s10  ;;  %v406_v11 = vadd.f32 %v405_v3, %v404_v56  ;;  %v325_v12 = vadd.f32 %v324_v4, %v323_v57  ;;  %v288_v13 = vadd.f32 %v287_v5, %v286_v58  ;;  %v309_v14 = vrot.slane %v308_v7, 4 }
  0x89   : > { %v347_v15 = vadd.f32 %v346_v6, %v345_v59  ;;  %v368_v16 = vrot.slane %v367_v8, 4  ;;  %v331_v17 = vrot.slane %v330_v9, 4  ;;  %v390_v18 = vrot.slane %v389_v10, 4 }
  0x8a   : > { %v407_v19 = vrot.slane %v406_v11, 2  ;;  %v326_v20 = vrot.slane %v325_v12, 2  ;;  %v289_v21 = vrot.slane %v288_v13, 2  ;;  %v310_v22 = vadd.f32 %v309_v14, %v308_v7 }
  0x8b   : > { %v348_v23 = vrot.slane %v347_v15, 2  ;;  %v369_v24 = vadd.f32 %v368_v16, %v367_v8  ;;  %v332_v25 = vadd.f32 %v331_v17, %v330_v9  ;;  %v391_v26 = vadd.f32 %v390_v18, %v389_v10 }
  0x8c   : > { %476 = vrot.lane.b32.xlu1 %v366_v60, %s1791_s5  ;;  %430 = vrot.lane.b32.xlu0 %v285_v61, %s1788_s29  ;;  %v408_v27 = vadd.f32 %v407_v19, %v406_v11  ;;  %v327_v28 = vadd.f32 %v326_v20, %v325_v12  ;;  %v290_v29 = vadd.f32 %v289_v21, %v288_v13  ;;  %v311_v30 = vrot.slane %v310_v22, 2 }
  0x8d   : > { %v349_v31 = vadd.f32 %v348_v23, %v347_v15  ;;  %v370_v32 = vrot.slane %v369_v24, 2  ;;  %v333_v33 = vrot.slane %v332_v25, 2  ;;  %v392_v34 = vrot.slane %v391_v26, 2 }
  0x8e   : > { %v409_v35 = vrot.slane %v408_v27, 1  ;;  %v328_v36 = vrot.slane %v327_v28, 1  ;;  %v291_v37 = vrot.slane %v290_v29, 1  ;;  %v312_v39 = vadd.f32 %v311_v30, %v310_v22 }
  0x8f   : > { %v350_v38 = vrot.slane %v349_v31, 1  ;;  %v371_v40 = vadd.f32 %v370_v32, %v369_v24  ;;  %v334_v43 = vadd.f32 %v333_v33, %v332_v25  ;;  %v393_v44 = vadd.f32 %v392_v34, %v391_v26 }
  0x90   : > { %488 = vrot.lane.b32.xlu1 %v388_v62, %s1792_s6  ;;  %442 = vrot.lane.b32.xlu0 %v307_v63, %s1790_s10  ;;  %v410_v41 = vadd.f32 %v409_v35, %v408_v27  ;;  %v329_v42 = vadd.f32 %v328_v36, %v327_v28  ;;  %v292_v45 = vadd.f32 %v291_v37, %v290_v29  ;;  %v352_v46 = vsel %vm337_vm2, %v2068_v47, 0.0 }
  0x91   : > { %v411_v48 = vsel %vm403_vm6, %v2049_v2, 0.0  ;;  %v374_v49 = vsel %vm359_vm4, %v2068_v47, 0.0  ;;  %v351_v50 = vadd.f32 %v350_v38, %v349_v31  ;;  %v313_v51 = vrot.slane %v312_v39, 1 }
  0x92   : > { %v372_v52 = vrot.slane %v371_v40, 1  ;;  %v353_v53 = vrot.slane %v352_v46, 4  ;;  %v412_v54 = vrot.slane %v411_v48, 4  ;;  %v375_v55 = vrot.slane %v374_v49, 4 }
  0x93   : > { %v396_v56 = vsel %vm381_vm5, %v2068_v47, 0.0  ;;  %v418_v57 = vsel %vm403_vm6, %v2068_v47, 0.0  ;;  %v335_v61 = vrot.slane %v334_v43, 1  ;;  %v394_v3 = vrot.slane %v393_v44, 1 }
  0x94   : > { %500 = vrot.lane.b32.xlu1 %v410_v41, %s1793_s7  ;;  %454 = vrot.lane.b32.xlu0 %v329_v42, %s1787_s18  ;;  %v354_v58 = vadd.f32 %v353_v53, %v352_v46  ;;  %v397_v59 = vrot.slane %v396_v56, 4  ;;  %v419_v60 = vrot.slane %v418_v57, 4  ;;  %v413_v62 = vadd.f32 %v412_v54, %v411_v48 }
  0x95   : > { %v376_v63 = vadd.f32 %v375_v55, %v374_v49  ;;  %v314_v7 = vadd.f32 %v313_v51, %v312_v39  ;;  %v373_v8 = vadd.f32 %v372_v52, %v371_v40  ;;  %v336_v14 = vadd.f32 %v335_v61, %v334_v43 }
  0x96   : > { %v355_v4 = vrot.slane %v354_v58, 2  ;;  %v398_v5 = vadd.f32 %v397_v59, %v396_v56  ;;  %v420_v6 = vadd.f32 %v419_v60, %v418_v57  ;;  %v414_v9 = vrot.slane %v413_v62, 2 }
  0x97   : > { %v377_v10 = vrot.slane %v376_v63, 2  ;;  %v395_v15 = vadd.f32 %v394_v3, %v393_v44  ;;  %v1794_v21 = vmov 4   ;;  %v1795_v31 = vmov 2  }
  0x98   : > { %432 = vrot.lane.b32.xlu1 %v292_v45, %s1788_s29  ;;  %466 = vrot.lane.b32.xlu0 %v351_v50, %s1789_s23  ;;  %v356_v11 = vadd.f32 %v355_v4, %v354_v58  ;;  %v399_v12 = vrot.slane %v398_v5, 2  ;;  %v415_v13 = vadd.f32 %v414_v9, %v413_v62  ;;  %v421_v16 = vrot.slane %v420_v6, 2 }
  0x99   : > { %v378_v19 = vadd.f32 %v377_v10, %v376_v63  ;;  %1590 = vset.pattern.permute.xlu0 %v1794_v21  ;;  %v1796_v32 = vmov 3   ;;  %v1797_v33 = vmov 5   ;;  %v1798_v34 = vmov 0  }
  0x9a   : > { %v357_v17 = vrot.slane %v356_v11, 1  ;;  %v416_v18 = vrot.slane %v415_v13, 1  ;;  %v400_v20 = vadd.f32 %v399_v12, %v398_v5  ;;  %v422_v22 = vadd.f32 %v421_v16, %v420_v6 }
  0x9b   : > { %v379_v25 = vrot.slane %v378_v19, 1  ;;  %v1799_v35 = vmov 6   ;;  %v1800_v36 = vmov 7   ;;  %vm249_vm7 = vcmask 7168  }
  0x9c   : > { %444 = vrot.lane.b32.xlu1 %v314_v7, %s1790_s10  ;;  %478 = vrot.lane.b32.xlu0 %v373_v8, %s1791_s5  ;;  %v358_v23 = vadd.f32 %v357_v17, %v356_v11  ;;  %v417_v24 = vadd.f32 %v416_v18, %v415_v13  ;;  %v401_v26 = vrot.slane %v400_v20, 1  ;;  %v423_v29 = vrot.slane %v422_v22, 1 }
  0x9d   : > { %v380_v27 = vadd.f32 %v379_v25, %v378_v19  ;;  %v250_v37 = vsel %vm249_vm7, %v2046_v1, 0.0  ;;  %v257_v44 = vsel %vm249_vm7, %v2049_v2, 0.0  ;;  %vm509_vm8 = vcmask 1040384  }
  0x9e   : > { %v402_v28 = vadd.f32 %v401_v26, %v400_v20  ;;  %v424_v30 = vadd.f32 %v423_v29, %v422_v22  ;;  %v251_v38 = vrot.slane %v250_v37, 4  ;;  %vm513_vm9 = vcmask 1041408  }
  0x9f   : > { %v264_v49 = vsel %vm249_vm7, %v2068_v47, 0.0  ;;  %vm517_vm10 = vcmask 1042432   ;;  %vm521_vm11 = vcmask 1043456   ;;  %vm525_vm12 = vcmask 1044480  }
  0xa0   : > { %456 = vrot.lane.b32.xlu1 %v336_v14, %s1787_s18  ;;  %490 = vrot.lane.b32.xlu0 %v395_v15, %s1792_s6  ;;  %v252_v39 = vadd.f32 %v251_v38, %v250_v37  ;;  %v265_v53 = vrot.slane %v264_v49, 4  ;;  %vm529_vm13 = vcmask 1045504   ;;  %vm533_vm14 = vcmask 1046528  }
  0xa1   : > { %vm1802_vm15 = vmmov 0   ;;  %vm582_vm0 = vcmask 261120  }
  0xa2   : > { %v253_v40 = vrot.slane %v252_v39, 2  ;;  %v266_v58 = vadd.f32 %v265_v53, %v264_v49  ;;  %v886_v49 = vld [vmem:[#allocation7 + $0x18] sm:$0xff] }
  0xa4   : > { %468 = vrot.lane.b32.xlu1 %v358_v23, %s1789_s23  ;;  %502 = vrot.lane.b32.xlu0 %v417_v24, %s1793_s7  ;;  %v254_v41 = vadd.f32 %v253_v40, %v252_v39  ;;  %v267_v3 = vrot.slane %v266_v58, 2 }
  0xa6   : > { %v255_v42 = vrot.slane %v254_v41, 1  ;;  %v268_v10 = vadd.f32 %v267_v3, %v266_v58 }
  0xa8   : > { %480 = vrot.lane.b32.xlu0 %v380_v27, %s1791_s5  ;;  %492 = vrot.lane.b32.xlu1 %v402_v28, %s1792_s6  ;;  %v256_v45 = vadd.f32 %v255_v42, %v254_v41  ;;  %v269_v14 = vrot.slane %v268_v10, 1 }
  0xaa   : > { %v270_v18 = vadd.f32 %v269_v14, %v268_v10 }
  0xac   : > { %504 = vrot.lane.b32.xlu0 %v424_v30, %s1793_s7  ;;  %605 = vperm.xlu1 %1587, %v2046_v1  }
  0xb0   : > { %1588 = vset.pattern.permute.xlu1 %v1795_v31  ;;  %713 = vperm.xlu0 %1590, %v2046_v1  }
  0xb1   : > { %641 = vperm.xlu1 %1588, %v2046_v1  }
  0xb4   : > { %717 = vperm.xlu0 %1590, %v2049_v2  }
  0xb5   : > { %1589 = vset.pattern.permute.xlu1 %v1796_v32 }
  0xb6   : > { %677 = vperm.xlu1 %1589, %v2046_v1  }
  0xb8   : > { %1597 = vset.pattern.permute.xlu0 %v1797_v33 }
  0xb9   : > { %749 = vperm.xlu0 %1597, %v2046_v1  }
  0xba   : > { %1591 = vset.pattern.permute.xlu1 %v1798_v34 }
  0xbb   : > { %571 = vperm.xlu1 %1591, %v2049_v2  }
  0xbd   : > { %753 = vperm.xlu0 %1597, %v2049_v2  }
  0xbf   : > { %1592 = vset.pattern.permute.xlu1 %v1786_v0 }
  0xc0   : > { %609 = vperm.xlu1 %1592, %v2049_v2  }
  0xc1   : > { %1602 = vset.pattern.permute.xlu0 %v1796_v32 }
  0xc2   : > { %685 = vperm.xlu0 %1602, %v2068_v47  }
  0xc4   : > { %1593 = vset.pattern.permute.xlu1 %v1795_v31 }
  0xc5   : > { %645 = vperm.xlu1 %1593, %v2049_v2  }
  0xc6   : > { %1603 = vset.pattern.permute.xlu0 %v1798_v34 }
  0xc7   : > { %566 = vperm.xlu0 %1603, %v2046_v1  }
  0xc9   : > { %1594 = vset.pattern.permute.xlu1 %v1799_v35 }
  0xca   : > { %785 = vperm.xlu1 %1594, %v2046_v1  }
  0xce   : > { %1595 = vset.pattern.permute.xlu1 %v1796_v32 }
  0xcf   : > { %681 = vperm.xlu1 %1595, %v2049_v2  }
  0xd3   : > { %1596 = vset.pattern.permute.xlu1 %v1800_v36 }
  0xd4   : > { %821 = vperm.xlu1 %1596, %v2046_v1   ;;  %v258_v1 = vrot.slane %v257_v44, 4 }
  0xd6   : > { %v259_v52 = vadd.f32 %v258_v1, %v257_v44  ;;  %v883_v1 = vld [vmem:[#allocation7] sm:$0xff] }
  0xd8   : > { %1598 = vset.pattern.permute.xlu1 %v1798_v34  ;;  %v260_v57 = vrot.slane %v259_v52, 2 }
  0xd9   : > { %576 = vperm.xlu1 %1598, %v2068_v47  }
  0xda   : > { %v261_v63 = vadd.f32 %v260_v57, %v259_v52 }
  0xdc   : > { %v262_v9 = vrot.slane %v261_v63, 1 }
  0xdd   : > { %1599 = vset.pattern.permute.xlu1 %v1786_v0 }
  0xde   : > { %613 = vperm.xlu1 %1599, %v2068_v47   ;;  %v263_v13 = vadd.f32 %v262_v9, %v261_v63 }
  0xe2   : > { %1600 = vset.pattern.permute.xlu1 %v1795_v31 }
  0xe3   : > { %649 = vperm.xlu1 %1600, %v2068_v47  }
  0xe7   : > { %1601 = vset.pattern.permute.xlu1 %v1799_v35 }
  0xe8   : > { %789 = vperm.xlu1 %1601, %v2049_v2  }
  0xec   : > { %1604 = vset.pattern.permute.xlu1 %v1798_v34 }
  0xf6   : > { %v453_v43 = vpop.permute.xlu1 %452  ;;  %v429_v0 = vpop.permute.xlu0 %428 }
  0xf7   : > { %v510_v50 = vsel %vm509_vm8, %v256_v45, %v429_v0 }
  0xfa   : > { %v465_v46 = vpop.permute.xlu1 %464  ;;  %v441_v48 = vpop.permute.xlu0 %440 }
  0xfb   : > { %v514_v51 = vsel %vm513_vm9, %v510_v50, %v441_v48  ;;  %v2572_v48 = vmov 0.0|0.0  }
  0xfc   : > { %v518_v56 = vsel %vm517_vm10, %v514_v51, %v453_v43  ;;  %1488 = vmatprep.subr.bf16.mxu0 %v2572_v48  ;;  %1494 = vmatprep.subr.bf16.mxu1 %v2572_v48  ;;  %v2573_v51 = vmov 0.0  }
  0xfd   : > { %v522_v59 = vsel %vm521_vm11, %v518_v56, %v465_v46  ;;  %1462 = vmatprep.mubr.msk.f32.mxu0 %vm1802_vm15, %v2573_v51  ;;  %1479 = vmatprep.mubr.msk.f32.mxu1 %vm1802_vm15, %v2573_v51 }
  0xfe   : > { %v477_v54 = vpop.permute.xlu1 %476  ;;  %v431_v55 = vpop.permute.xlu0 %430 }
  0xff   : > { %v526_v62 = vsel %vm525_vm12, %v522_v59, %v477_v54  ;;  %v511_v17 = vsel %vm509_vm8, %v263_v13, %v431_v55 }
 0x102   : > { %v489_v60 = vpop.permute.xlu1 %488  ;;  %v443_v61 = vpop.permute.xlu0 %442 }
 0x103   : > { %v530_v4 = vsel %vm529_vm13, %v526_v62, %v489_v60  ;;  %v515_v19 = vsel %vm513_vm9, %v511_v17, %v443_v61 }
 0x106   : > { %v501_v5 = vpop.permute.xlu1 %500  ;;  %v455_v6 = vpop.permute.xlu0 %454 }
 0x107   : > { %v534_v7 = vsel %vm533_vm14, %v530_v4, %v501_v5  ;;  %v519_v23 = vsel %vm517_vm10, %v515_v19, %v455_v6  ;;  %v543_v6 = vld [vmem:[%s2034_s9] sm:$0xff] }
 0x108   : > { %v537_v8 = vadd.f32 1.0, %v534_v7 }
 0x10a   : > { %1611 = vrsqrt.f32 %v537_v8  ;;  %v433_v11 = vpop.permute.xlu1 %432  ;;  %v467_v12 = vpop.permute.xlu0 %466 }
 0x10b   : > { %v523_v25 = vsel %vm521_vm11, %v519_v23, %v467_v12  ;;  %v512_v26 = vsel %vm509_vm8, %v270_v18, %v433_v11 }
 0x10e   : > { %v445_v15 = vpop.permute.xlu1 %444  ;;  %v479_v16 = vpop.permute.xlu0 %478 }
 0x10f   : > { %v527_v27 = vsel %vm525_vm12, %v523_v25, %v479_v16  ;;  %v516_v32 = vsel %vm513_vm9, %v512_v26, %v445_v15 }
 0x112   : > { %v457_v20 = vpop.permute.xlu1 %456  ;;  %v491_v22 = vpop.permute.xlu0 %490 }
 0x113   : > { %v531_v28 = vsel %vm529_vm13, %v527_v27, %v491_v22  ;;  %v520_v37 = vsel %vm517_vm10, %v516_v32, %v457_v20 }
 0x114   : > { %v1612_v24 = vpop.eup %1611 }
 0x115   : > { %548 = vperm.xlu1 %1604, %v1612_v24  }
 0x116   : > { %v469_v29 = vpop.permute.xlu1 %468  ;;  %v503_v30 = vpop.permute.xlu0 %502 }
 0x117   : > { %v535_v31 = vsel %vm533_vm14, %v531_v28, %v503_v30  ;;  %v524_v38 = vsel %vm521_vm11, %v520_v37, %v469_v29 }
 0x118   : > { %v538_v34 = vadd.f32 1.0, %v535_v31 }
 0x119   : > { %1605 = vset.pattern.permute.xlu1 %v1800_v36 }
 0x11a   : > { %1613 = vrsqrt.f32 %v538_v34  ;;  %v481_v39 = vpop.permute.xlu0 %480  ;;  %825 = vperm.xlu1 %1605, %v2049_v2   ;;  %v493_v41 = vpop.permute.xlu1 %492 }
 0x11b   : > { %v528_v40 = vsel %vm525_vm12, %v524_v38, %v481_v39 }
 0x11c   : > { %v532_v42 = vsel %vm529_vm13, %v528_v40, %v493_v41 }
 0x11e   : > { %v505_v43 = vpop.permute.xlu0 %504  ;;  %1606 = vset.pattern.permute.xlu1 %v1794_v21  ;;  %v884_v21 = vld [vmem:[#allocation7 + $0x8] sm:$0xff] }
 0x11f   : > { %v536_v0 = vsel %vm533_vm14, %v532_v42, %v505_v43  ;;  %721 = vperm.xlu1 %1606, %v2068_v47   ;;  %v1489_v46 = vpack.c.bf16 %v884_v21, %v883_v1 }
 0x120   : > { %v539_v44 = vadd.f32 1.0, %v536_v0 }
 0x121   : > { %1490 = vmatpush3.bf16.msra.mxu0 %v1489_v46 }
 0x122   : > { %1615 = vrsqrt.f32 %v539_v44  ;;  %1491 = vmatprep.subr.bf16.mxu0 %v2572_v48 }
 0x123   : > { %1608 = vset.pattern.permute.xlu1 %v1799_v35  ;;  %v885_v35 = vld [vmem:[#allocation7 + $0x10] sm:$0xff] }
 0x124   : > { %v1614_v45 = vpop.eup %1613  ;;  %793 = vperm.xlu1 %1608, %v2068_v47   ;;  %v1492_v50 = vpack.c.bf16 %v886_v49, %v885_v35 }
 0x125   : > { %553 = vperm.xlu0 %1603, %v1614_v45  }
 0x126   : > { %1493 = vmatpush3.bf16.msra.mxu0 %v1492_v50 }
 0x128   : > { %1609 = vset.pattern.permute.xlu1 %v1800_v36 }
 0x129   : > { %829 = vperm.xlu1 %1609, %v2068_v47  }
 0x12c   : > { %v1616_v2 = vpop.eup %1615 }
 0x12d   : > { %558 = vperm.xlu0 %1603, %v1616_v2  }
 0x12f   : > { %v2206_v58 = vpop.permute.xlu0 %713 }
 0x131   : > { %1607 = vset.pattern.permute.xlu0 %v1797_v33  ;;  %v2188_v33 = vpop.permute.xlu1 %605 }
 0x132   : > { %757 = vperm.xlu0 %1607, %v2068_v47  }
 0x133   : > { %v2210_v60 = vpop.permute.xlu0 %717 }
 0x135   : > { %v2190_v52 = vpop.permute.xlu1 %641 }
 0x136   : > { %1610 = vset.pattern.permute.xlu0 %v1800_v36 }
 0x138   : > { %v2214_v62 = vpop.permute.xlu0 %749 }
 0x139   : > { %v2192_v47 = vpop.permute.xlu1 %677 }
 0x13c   : > { %v2218_v3 = vpop.permute.xlu0 %753 }
 0x13d   : > { %v2194_v53 = vpop.permute.xlu1 %571 }
 0x141   : > { %v2196_v54 = vpop.permute.xlu1 %609  ;;  %v2222_v5 = vpop.permute.xlu0 %685 }
 0x142   : > { %2591 = vst [vmem:[#allocation13_spill] sm:$0xff] %v2222_v5 }
 0x145   : > { %v2198_v36 = vpop.permute.xlu1 %645 }
 0x146   : > { %v2227_v8 = vpop.permute.xlu0 %566 }
 0x149   : > { %v2200_v55 = vpop.permute.xlu1 %785 }
 0x14e   : > { %v2202_v56 = vpop.permute.xlu1 %681 }
 0x153   : > { %v2204_v57 = vpop.permute.xlu1 %821 }
 0x158   : > { %v2208_v59 = vpop.permute.xlu1 %576 }
 0x15d   : > { %v2212_v61 = vpop.permute.xlu1 %613 }
 0x162   : > { %v2216_v63 = vpop.permute.xlu1 %649 }
 0x167   : > { %v2220_v4 = vpop.permute.xlu1 %789 }
 0x194   : > { %v2225_v7 = vpop.permute.xlu1 %548 }
 0x195   : > { %v2230_v9 = vmul.f32 %v2225_v7, %v543_v6 }
 0x197   : > { %v579_v10 = vmul.f32 %v2227_v8, %v2230_v9  ;;  %v616_v11 = vmul.f32 %v2188_v33, %v2230_v9  ;;  %v652_v12 = vmul.f32 %v2190_v52, %v2230_v9  ;;  %v688_v13 = vmul.f32 %v2192_v47, %v2230_v9 }
 0x198   : > { %v724_v14 = vmul.f32 %v2206_v58, %v2230_v9  ;;  %v760_v15 = vmul.f32 %v2214_v62, %v2230_v9  ;;  %v796_v16 = vmul.f32 %v2200_v55, %v2230_v9  ;;  %v832_v17 = vmul.f32 %v2204_v57, %v2230_v9 }
 0x199   : > { %v583_v18 = vsel %vm582_vm0, %v579_v10, 0.0  ;;  %v619_v19 = vsel %vm582_vm0, %v616_v11, 0.0  ;;  %v655_v20 = vsel %vm582_vm0, %v652_v12, 0.0  ;;  %v691_v22 = vsel %vm582_vm0, %v688_v13, 0.0  ;;  %v544_v11 = vld [vmem:[%s2034_s9 + $0x8] sm:$0xff] }
 0x19a   : > { %v584_v23 = vrot.slane %v583_v18, 4  ;;  %v620_v24 = vrot.slane %v619_v19, 4  ;;  %v656_v25 = vrot.slane %v655_v20, 4  ;;  %v692_v26 = vrot.slane %v691_v22, 4 }
 0x19b   : > { %v727_v27 = vsel %vm582_vm0, %v724_v14, 0.0  ;;  %v763_v28 = vsel %vm582_vm0, %v760_v15, 0.0  ;;  %v799_v29 = vsel %vm582_vm0, %v796_v16, 0.0  ;;  %v835_v30 = vsel %vm582_vm0, %v832_v17, 0.0 }
 0x19c   : > { %v585_v31 = vadd.f32 %v584_v23, %v583_v18  ;;  %v621_v32 = vadd.f32 %v620_v24, %v619_v19  ;;  %v657_v34 = vadd.f32 %v656_v25, %v655_v20  ;;  %v693_v37 = vadd.f32 %v692_v26, %v691_v22  ;;  %v2262_v19 = vpop.permute.xlu1 %825 }
 0x19d   : > { %v728_v38 = vrot.slane %v727_v27, 4  ;;  %v764_v39 = vrot.slane %v763_v28, 4  ;;  %v800_v40 = vrot.slane %v799_v29, 4  ;;  %v836_v41 = vrot.slane %v835_v30, 4 }
 0x19e   : > { %v586_v42 = vrot.slane %v585_v31, 2  ;;  %v622_v43 = vrot.slane %v621_v32, 2  ;;  %v658_v0 = vrot.slane %v657_v34, 2  ;;  %v694_v44 = vrot.slane %v693_v37, 2 }
 0x19f   : > { %v729_v45 = vadd.f32 %v728_v38, %v727_v27  ;;  %v765_v2 = vadd.f32 %v764_v39, %v763_v28  ;;  %v801_v1 = vadd.f32 %v800_v40, %v799_v29  ;;  %v837_v21 = vadd.f32 %v836_v41, %v835_v30 }
 0x1a0   : > { %v587_v46 = vadd.f32 %v586_v42, %v585_v31  ;;  %v623_v35 = vadd.f32 %v622_v43, %v621_v32  ;;  %v659_v49 = vadd.f32 %v658_v0, %v657_v34  ;;  %v2256_v50 = vadd.f32 %v694_v44, %v693_v37 }
 0x1a1   : > { %v730_v6 = vrot.slane %v729_v45, 2  ;;  %v766_v12 = vrot.slane %v765_v2, 2  ;;  %v802_v13 = vrot.slane %v801_v1, 2  ;;  %v838_v14 = vrot.slane %v837_v21, 2 }
 0x1a2   : > { %v588_v10 = vrot.slane %v587_v46, 1  ;;  %v624_v15 = vrot.slane %v623_v35, 1  ;;  %v660_v16 = vrot.slane %v659_v49, 1 }
 0x1a3   : > { %v2267_v22 = vadd.f32 %v730_v6, %v729_v45  ;;  %v2271_v24 = vadd.f32 %v766_v12, %v765_v2  ;;  %v2273_v25 = vadd.f32 %v802_v13, %v801_v1  ;;  %v2275_v26 = vadd.f32 %v838_v14, %v837_v21 }
 0x1a4   : > { %v2259_v17 = vpop.permute.xlu0 %553  ;;  %v2269_v23 = vadd.f32 %v588_v10, %v587_v46  ;;  %v2277_v27 = vadd.f32 %v624_v15, %v623_v35  ;;  %v2285_v31 = vadd.f32 %v660_v16, %v659_v49  ;;  %v2302_v46 = vpop.permute.xlu1 %721 }
 0x1a5   : > { %v2265_v20 = vmul.f32 %v2259_v17, %v544_v11  ;;  %2592 = vst [vmem:[#allocation14_spill] sm:$0xff] %v2302_v46 }
 0x1a7   : > { %v580_v28 = vmul.f32 %v2194_v53, %v2265_v20  ;;  %v617_v29 = vmul.f32 %v2196_v54, %v2265_v20  ;;  %v653_v30 = vmul.f32 %v2198_v36, %v2265_v20  ;;  %v689_v32 = vmul.f32 %v2202_v56, %v2265_v20 }
 0x1a8   : > { %v725_v34 = vmul.f32 %v2210_v60, %v2265_v20  ;;  %v761_v37 = vmul.f32 %v2218_v3, %v2265_v20  ;;  %v797_v41 = vmul.f32 %v2220_v4, %v2265_v20  ;;  %v833_v14 = vmul.f32 %v2262_v19, %v2265_v20 }
 0x1a9   : > { %v590_v38 = vsel %vm582_vm0, %v580_v28, 0.0  ;;  %v626_v39 = vsel %vm582_vm0, %v617_v29, 0.0  ;;  %v662_v40 = vsel %vm582_vm0, %v653_v30, 0.0  ;;  %v698_v44 = vsel %vm582_vm0, %v689_v32, 0.0 }
 0x1aa   : > { %v591_v42 = vrot.slane %v590_v38, 4  ;;  %v627_v43 = vrot.slane %v626_v39, 4  ;;  %v663_v0 = vrot.slane %v662_v40, 4  ;;  %v699_v45 = vrot.slane %v698_v44, 4 }
 0x1ab   : > { %v734_v2 = vsel %vm582_vm0, %v725_v34, 0.0  ;;  %v770_v1 = vsel %vm582_vm0, %v761_v37, 0.0  ;;  %v806_v21 = vsel %vm582_vm0, %v797_v41, 0.0  ;;  %v842_v37 = vsel %vm582_vm0, %v833_v14, 0.0 }
 0x1ac   : > { %v592_v35 = vadd.f32 %v591_v42, %v590_v38  ;;  %v628_v49 = vadd.f32 %v627_v43, %v626_v39  ;;  %v664_v6 = vadd.f32 %v663_v0, %v662_v40  ;;  %v735_v10 = vrot.slane %v734_v2, 4 }
 0x1ad   : > { %v700_v11 = vadd.f32 %v699_v45, %v698_v44  ;;  %v771_v12 = vrot.slane %v770_v1, 4  ;;  %v807_v13 = vrot.slane %v806_v21, 4  ;;  %v843_v44 = vrot.slane %v842_v37, 4  ;;  %v2307_v45 = vpop.permute.xlu1 %793 }
 0x1ae   : > { %v593_v15 = vrot.slane %v592_v35, 2  ;;  %v629_v16 = vrot.slane %v628_v49, 2  ;;  %v665_v28 = vrot.slane %v664_v6, 2  ;;  %v736_v29 = vadd.f32 %v735_v10, %v734_v2 }
 0x1af   : > { %v701_v30 = vrot.slane %v700_v11, 2  ;;  %v772_v32 = vadd.f32 %v771_v12, %v770_v1  ;;  %v808_v34 = vadd.f32 %v807_v13, %v806_v21  ;;  %v844_v12 = vadd.f32 %v843_v44, %v842_v37  ;;  %v545_v13 = vld [vmem:[%s2034_s9 + $0x10] sm:$0xff]  ;;  %s1711_s9 = scalar_lea.vmem %s1710_s8, 768 }
 0x1b0   : > { %v594_v41 = vadd.f32 %v593_v15, %v592_v35  ;;  %v630_v38 = vadd.f32 %v629_v16, %v628_v49  ;;  %v666_v39 = vadd.f32 %v665_v28, %v664_v6  ;;  %v737_v40 = vrot.slane %v736_v29, 2  ;;  %v2310_v35 = vpop.permute.xlu0 %558  ;;  %p1713_p5 = scmp.lt.s32.totalorder %s1711_s9, %s1705_s20 }
 0x1b1   : > { %v702_v42 = vadd.f32 %v701_v30, %v700_v11  ;;  %v773_v43 = vrot.slane %v772_v32, 2  ;;  %v809_v0 = vrot.slane %v808_v34, 2  ;;  %v2593_v15 = vrot.slane %v2256_v50, 1 }
 0x1b2   : > { %v595_v48 = vrot.slane %v594_v41, 1  ;;  %v631_v51 = vrot.slane %v630_v38, 1  ;;  %v667_v18 = vrot.slane %v666_v39, 1  ;;  %v738_v2 = vadd.f32 %v737_v40, %v736_v29  ;;  %p1714_p2 = por %p1713_p5, %p1712_p1 }
 0x1b3   : > { %v703_v10 = vrot.slane %v702_v42, 1  ;;  %v774_v1 = vadd.f32 %v773_v43, %v772_v32  ;;  %v810_v21 = vadd.f32 %v809_v0, %v808_v34  ;;  %v697_v16 = vadd.f32 %v2593_v15, %v2256_v50 }
 0x1b4   : > { %v596_v49 = vadd.f32 %v595_v48, %v594_v41  ;;  %v632_v6 = vadd.f32 %v631_v51, %v630_v38  ;;  %v668_v14 = vadd.f32 %v667_v18, %v666_v39  ;;  %v739_v11 = vrot.slane %v738_v2, 1  ;;  %v2326_v41 = vpop.permute.xlu1 %829  ;;  %p1715_p6 = pnand %p1714_p2, %p1708_p9 }
 0x1b5   : > { %v845_v28 = vrot.slane %v844_v12, 2  ;;  %v732_v30 = vrot.slane %v2267_v22, 1  ;;  %v704_v40 = vadd.f32 %v703_v10, %v702_v42  ;;  %v2319_v34 = vmul.f32 %v2310_v35, %v545_v13  ;;  %2594 = vst [vmem:[#allocation15_spill] sm:$0xff] %v2326_v41 }
 0x1b6   : > { %v857_v32 = vsel %vm509_vm8, %v596_v49, %v632_v6  ;;  %v856_v51 = vsel %vm509_vm8, %v2269_v23, %v2277_v27  ;;  %v775_v18 = vrot.slane %v774_v1, 1  ;;  %v811_v37 = vrot.slane %v810_v21, 1 }
 0x1b7   : > { %v860_v50 = vsel %vm513_vm9, %v857_v32, %v668_v14  ;;  %v740_v38 = vadd.f32 %v739_v11, %v738_v2  ;;  %v581_v42 = vmul.f32 %v2208_v59, %v2319_v34  ;;  %v618_v43 = vmul.f32 %v2212_v61, %v2319_v34 }
 0x1b8   : > { %v863_v39 = vsel %vm517_vm10, %v860_v50, %v704_v40  ;;  %v846_v0 = vadd.f32 %v845_v28, %v844_v12  ;;  %v654_v44 = vmul.f32 %v2216_v63, %v2319_v34  ;;  %v690_v23 = vmul.f32 %v2222_v5, %v2319_v34 }
 0x1b9   : > { %v840_v27 = vrot.slane %v2275_v26, 1  ;;  %v866_v10 = vsel %vm521_vm11, %v863_v39, %v740_v38  ;;  %v834_v2 = vmul.f32 %v2326_v41, %v2319_v34  ;;  %v597_v13 = vsel %vm582_vm0, %v581_v42, 0.0 }
 0x1ba   : > { %v633_v49 = vsel %vm582_vm0, %v618_v43, 0.0  ;;  %v859_v12 = vsel %vm513_vm9, %v856_v51, %v2285_v31  ;;  %v776_v6 = vadd.f32 %v775_v18, %v774_v1  ;;  %v812_v14 = vadd.f32 %v811_v37, %v810_v21  ;;  %v2350_v43 = vpop.permute.xlu0 %757 }
 0x1bb   : > { %v598_v11 = vrot.slane %v597_v13, 4  ;;  %v634_v15 = vrot.slane %v633_v49, 4  ;;  %v669_v28 = vsel %vm582_vm0, %v654_v44, 0.0  ;;  %v705_v40 = vsel %vm582_vm0, %v690_v23, 0.0  ;;  %2595 = vst [vmem:[#allocation16_spill] sm:$0xff] %v2350_v43 }
 0x1bc   : > { %v726_v32 = vmul.f32 %v2302_v46, %v2319_v34  ;;  %v847_v50 = vrot.slane %v846_v0, 1  ;;  %v869_v38 = vsel %vm525_vm12, %v866_v10, %v776_v6  ;;  %v670_v42 = vrot.slane %v669_v28, 4 }
 0x1bd   : > { %v599_v39 = vadd.f32 %v598_v11, %v597_v13  ;;  %v849_v31 = vsel %vm582_vm0, %v834_v2, 0.0  ;;  %v635_v1 = vadd.f32 %v634_v15, %v633_v49  ;;  %v706_v21 = vrot.slane %v705_v40, 4 }
 0x1be   : > { %v741_v51 = vsel %vm582_vm0, %v726_v32, 0.0  ;;  %v862_v18 = vsel %vm517_vm10, %v859_v12, %v697_v16  ;;  %v671_v44 = vadd.f32 %v670_v42, %v669_v28  ;;  %v872_v48 = vsel %vm529_vm13, %v869_v38, %v812_v14 }
 0x1bf   : > { %v600_v37 = vrot.slane %v599_v39, 2  ;;  %v742_v23 = vrot.slane %v741_v51, 4  ;;  %v636_v29 = vrot.slane %v635_v1, 2  ;;  %v707_v41 = vadd.f32 %v706_v21, %v705_v40 }
 0x1c0   : > { %v762_v10 = vmul.f32 %v2350_v43, %v2319_v34  ;;  %v850_v13 = vrot.slane %v849_v31, 4  ;;  %v672_v11 = vrot.slane %v671_v44, 2  ;;  %v848_v49 = vadd.f32 %v847_v50, %v846_v0 }
 0x1c1   : > { %v601_v6 = vadd.f32 %v600_v37, %v599_v39  ;;  %v743_v2 = vadd.f32 %v742_v23, %v741_v51  ;;  %v637_v15 = vadd.f32 %v636_v29, %v635_v1  ;;  %v708_v46 = vrot.slane %v707_v41, 2 }
 0x1c2   : > { %v777_v32 = vsel %vm582_vm0, %v762_v10, 0.0  ;;  %v673_v12 = vadd.f32 %v672_v11, %v671_v44  ;;  %v733_v42 = vadd.f32 %v732_v30, %v2267_v22  ;;  %v875_v14 = vsel %vm533_vm14, %v872_v48, %v848_v49 }
 0x1c3   : > { %v602_v16 = vrot.slane %v601_v6, 1  ;;  %v744_v28 = vrot.slane %v743_v2, 2  ;;  %v638_v40 = vrot.slane %v637_v15, 1  ;;  %v709_v38 = vadd.f32 %v708_v46, %v707_v41 }
 0x1c4   : > { %v778_v21 = vrot.slane %v777_v32, 4  ;;  %v851_v43 = vadd.f32 %v850_v13, %v849_v31  ;;  %v674_v39 = vrot.slane %v673_v12, 1  ;;  %v2596_v29 = vrot.slane %v2271_v24, 1 }
 0x1c5   : > { %v603_v5 = vadd.f32 %v602_v16, %v601_v6  ;;  %v745_v37 = vadd.f32 %v744_v28, %v743_v2  ;;  %v639_v51 = vadd.f32 %v638_v40, %v637_v15  ;;  %v2597_v1 = vrot.slane %v2273_v25, 1 }
 0x1c6   : > { %v779_v0 = vadd.f32 %v778_v21, %v777_v32  ;;  %v769_v50 = vadd.f32 %v2596_v29, %v2271_v24  ;;  %v675_v22 = vadd.f32 %v674_v39, %v673_v12  ;;  %v710_v30 = vrot.slane %v709_v38, 1 }
 0x1c7   : > { %v805_v44 = vadd.f32 %v2597_v1, %v2273_v25  ;;  %v865_v48 = vsel %vm521_vm11, %v862_v18, %v733_v42  ;;  %v798_v46 = vmul.f32 %v2307_v45, %v2319_v34  ;;  %v858_v41 = vsel %vm509_vm8, %v603_v5, %v639_v51 }
 0x1c8   : > { %v780_v31 = vrot.slane %v779_v0, 2  ;;  %v841_v23 = vadd.f32 %v840_v27, %v2275_v26  ;;  %v868_v10 = vsel %vm525_vm12, %v865_v48, %v769_v50  ;;  %v852_v13 = vrot.slane %v851_v43, 2  ;;  %v1204_v48 = vld [vmem:[#allocation7 + $0x30] sm:$0xff] }
 0x1c9   : > { %v746_v24 = vrot.slane %v745_v37, 1  ;;  %v871_v6 = vsel %vm529_vm13, %v868_v10, %v805_v44  ;;  %v813_v25 = vsel %vm582_vm0, %v798_v46, 0.0  ;;  %v861_v11 = vsel %vm513_vm9, %v858_v41, %v675_v22  ;;  %v1202_v22 = vld [vmem:[#allocation7 + $0x20] sm:$0xff]  ;;  %v1205_v41 = vld [vmem:[#allocation7 + $0x38] sm:$0xff] }
 0x1ca   : > { %v781_v2 = vadd.f32 %v780_v31, %v779_v0  ;;  %v874_v18 = vsel %vm533_vm14, %v871_v6, %v841_v23  ;;  %v814_v49 = vrot.slane %v813_v25, 4  ;;  %v878_v15 = vadd.f32 %v875_v14, %v2265_v20 }
 0x1cb   : > { %v711_v5 = vadd.f32 %v710_v30, %v709_v38  ;;  %v877_v32 = vadd.f32 %v874_v18, %v2230_v9  ;;  %v853_v16 = vadd.f32 %v852_v13, %v851_v43  ;;  %v747_v42 = vadd.f32 %v746_v24, %v745_v37  ;;  %v1203_v30 = vld [vmem:[#allocation7 + $0x28] sm:$0xff] }
 0x1cc   : > { %v782_v26 = vrot.slane %v781_v2, 1  ;;  %v815_v27 = vadd.f32 %v814_v49, %v813_v25  ;;  %v881_v21 = vmul.f32 %v878_v15, %v2259_v17  ;;  %v2598_v20 = vmov 0.0  }
 0x1cd   : > { %v864_v12 = vsel %vm517_vm10, %v861_v11, %v711_v5  ;;  %v880_v28 = vmul.f32 %v877_v32, %v2225_v7  ;;  %v854_v14 = vrot.slane %v853_v16, 1  ;;  %v1495_v46 = vpack.c.bf16 %v1203_v30, %v1202_v22 }
 0x1ce   : > { %v816_v40 = vrot.slane %v815_v27, 2  ;;  %v783_v39 = vadd.f32 %v782_v26, %v781_v2  ;;  %v867_v51 = vsel %vm521_vm11, %v864_v12, %v747_v42  ;;  %v1498_v31 = vpack.c.bf16 %v1205_v41, %v1204_v48 }
 0x1cf   : > { %1463 = vmatmul.mubr.msk.f32.vlgmr.msra.gmra.mrb[0].mxu0 %vm582_vm0, %v880_v28  ;;  %v855_v0 = vadd.f32 %v854_v14, %v853_v16  ;;  %1496 = vmatpush3.bf16.msra.mxu1 %v1495_v46  ;;  %v2599_v23 = vmov 0.0|0.0  }
 0x1d0   : > { %1465 = vmatprep.mubr.msk.f32.mxu0 %vm1802_vm15, %v2598_v20  ;;  %v817_v9 = vadd.f32 %v816_v40, %v815_v27  ;;  %v870_v43 = vsel %vm525_vm12, %v867_v51, %v783_v39  ;;  %1497 = vmatprep.subr.bf16.mxu1 %v2599_v23 }
 0x1d2   : > { %v818_v38 = vrot.slane %v817_v9, 1 }
 0x1d3   : > { %1466 = vmatmul.mubr.msk.f32.gmra.mrb[2].mxu0 %vm582_vm0, %v881_v21  ;;  %1499 = vmatpush3.bf16.msra.mxu1 %v1498_v31 }
 0x1d4   : > { %1468 = vmatprep.mubr.msk.f32.mxu0 %vm1802_vm15, %v2598_v20  ;;  %v819_v37 = vadd.f32 %v818_v38, %v817_v9 }
 0x1d6   : > { %v873_v29 = vsel %vm529_vm13, %v870_v43, %v819_v37 }
 0x1d7   : > { %v876_v50 = vsel %vm533_vm14, %v873_v29, %v855_v0 }
 0x1d8   : > { %v879_v1 = vadd.f32 %v876_v50, %v2319_v34 }
 0x1da   : > { %v882_v44 = vmul.f32 %v879_v1, %v2310_v35 }
 0x1dc   : > { %1469 = vmatmul.mubr.msk.f32.gmra.mrb[4].mxu0 %vm582_vm0, %v882_v44 }
 0x2a2   : > { %v962_v10 = vpop.f32.mrb[0].mxu0 }
 0x2a3   : > { %v976_v13 = vmax.f32 %v962_v10, 0.0  ;;  %v1464_v24 = vpop.f32.mrb[1].mxu0 }
 0x2a5   : > { %v2397_v6 = vmul.f32 %v976_v13, %v2225_v7 }
 0x2a6   : > { %v967_v34 = vpop.f32.mrb[2].mxu0 }
 0x2a7   : > { %v977_v25 = vmax.f32 %v967_v34, 0.0  ;;  %v1467_v11 = vpop.f32.mrb[3].mxu0  ;;  %v982_v2 = vmul.f32 %v2397_v6, %v2227_v8  ;;  %v1006_v18 = vmul.f32 %v2397_v6, %v2188_v33  ;;  %v1030_v49 = vmul.f32 %v2397_v6, %v2190_v52 }
 0x2a8   : > { %v1054_v15 = vmul.f32 %v2397_v6, %v2192_v47  ;;  %v1078_v5 = vmul.f32 %v2397_v6, %v2206_v58  ;;  %v1102_v32 = vmul.f32 %v2397_v6, %v2214_v62  ;;  %v1126_v26 = vmul.f32 %v2397_v6, %v2200_v55 }
 0x2a9   : > { %v2414_v8 = vmul.f32 %v977_v25, %v2259_v17  ;;  %v985_v33 = vsel %vm582_vm0, %v982_v2, 0.0  ;;  %v1009_v27 = vsel %vm582_vm0, %v1006_v18, 0.0  ;;  %v1033_v52 = vsel %vm582_vm0, %v1030_v49, 0.0 }
 0x2aa   : > { %v986_v16 = vrot.slane %v985_v33, 4  ;;  %v1010_v47 = vrot.slane %v1009_v27, 4  ;;  %v1034_v12 = vrot.slane %v1033_v52, 4  ;;  %v1057_v58 = vsel %vm582_vm0, %v1054_v15, 0.0 }
 0x2ab   : > { %v1058_v28 = vrot.slane %v1057_v58, 4  ;;  %v1081_v62 = vsel %vm582_vm0, %v1078_v5, 0.0  ;;  %v1105_v42 = vsel %vm582_vm0, %v1102_v32, 0.0  ;;  %v1129_v55 = vsel %vm582_vm0, %v1126_v26, 0.0 }
 0x2ac   : > { %v987_v40 = vadd.f32 %v986_v16, %v985_v33  ;;  %v1011_v21 = vadd.f32 %v1010_v47, %v1009_v27  ;;  %v1035_v39 = vadd.f32 %v1034_v12, %v1033_v52  ;;  %v1082_v51 = vrot.slane %v1081_v62, 4 }
 0x2ad   : > { %v1059_v9 = vadd.f32 %v1058_v28, %v1057_v58  ;;  %v1106_v14 = vrot.slane %v1105_v42, 4  ;;  %v1130_v38 = vrot.slane %v1129_v55, 4  ;;  %v1150_v43 = vmul.f32 %v2397_v6, %v2204_v57 }
 0x2ae   : > { %v988_v37 = vrot.slane %v987_v40, 2  ;;  %v1012_v0 = vrot.slane %v1011_v21, 2  ;;  %v1036_v29 = vrot.slane %v1035_v39, 2  ;;  %v1083_v50 = vadd.f32 %v1082_v51, %v1081_v62 }
 0x2af   : > { %v972_v1 = vpop.f32.mrb[4].mxu0  ;;  %v1060_v44 = vrot.slane %v1059_v9, 2  ;;  %v1107_v22 = vadd.f32 %v1106_v14, %v1105_v42  ;;  %v1131_v30 = vadd.f32 %v1130_v38, %v1129_v55  ;;  %v1153_v48 = vsel %vm582_vm0, %v1150_v43, 0.0 }
 0x2b0   : > { %v978_v46 = vmax.f32 %v972_v1, 0.0  ;;  %v1470_v41 = vpop.f32.mrb[5].mxu0  ;;  %v989_v31 = vadd.f32 %v988_v37, %v987_v40  ;;  %v1013_v23 = vadd.f32 %v1012_v0, %v1011_v21  ;;  %v1037_v10 = vadd.f32 %v1036_v29, %v1035_v39 }
 0x2b1   : > { %v1061_v13 = vadd.f32 %v1060_v44, %v1059_v9  ;;  %v1084_v24 = vrot.slane %v1083_v50, 2  ;;  %v1108_v34 = vrot.slane %v1107_v22, 2  ;;  %v1132_v25 = vrot.slane %v1131_v30, 2 }
 0x2b2   : > { %v2427_v57 = vmul.f32 %v978_v46, %v2310_v35  ;;  %v990_v11 = vrot.slane %v989_v31, 1  ;;  %v1014_v2 = vrot.slane %v1013_v23, 1  ;;  %v1038_v18 = vrot.slane %v1037_v10, 1 }
 0x2b3   : > { %v1062_v49 = vrot.slane %v1061_v13, 1  ;;  %v1085_v15 = vadd.f32 %v1084_v24, %v1083_v50  ;;  %v1109_v5 = vadd.f32 %v1108_v34, %v1107_v22  ;;  %v1133_v32 = vadd.f32 %v1132_v25, %v1131_v30 }
 0x2b4   : > { %v991_v26 = vadd.f32 %v990_v11, %v989_v31  ;;  %v1015_v33 = vadd.f32 %v1014_v2, %v1013_v23  ;;  %v1039_v27 = vadd.f32 %v1038_v18, %v1037_v10  ;;  %v1154_v52 = vrot.slane %v1153_v48, 4 }
 0x2b5   : > { %v1063_v16 = vadd.f32 %v1062_v49, %v1061_v13  ;;  %v1086_v47 = vrot.slane %v1085_v15, 1  ;;  %v1110_v12 = vrot.slane %v1109_v5, 1  ;;  %v1134_v58 = vrot.slane %v1133_v32, 1 }
 0x2b6   : > { %v1155_v28 = vadd.f32 %v1154_v52, %v1153_v48  ;;  %v1174_v62 = vsel %vm509_vm8, %v991_v26, %v1015_v33  ;;  %v983_v42 = vmul.f32 %v2414_v8, %v2194_v53  ;;  %v1007_v55 = vmul.f32 %v2414_v8, %v2196_v54 }
 0x2b7   : > { %v1087_v40 = vadd.f32 %v1086_v47, %v1085_v15  ;;  %v1111_v21 = vadd.f32 %v1110_v12, %v1109_v5  ;;  %v1135_v39 = vadd.f32 %v1134_v58, %v1133_v32  ;;  %v1177_v51 = vsel %vm513_vm9, %v1174_v62, %v1039_v27 }
 0x2b8   : > { %v1156_v9 = vrot.slane %v1155_v28, 2  ;;  %v1180_v14 = vsel %vm517_vm10, %v1177_v51, %v1063_v16  ;;  %v992_v38 = vsel %vm582_vm0, %v983_v42, 0.0  ;;  %v1016_v43 = vsel %vm582_vm0, %v1007_v55, 0.0 }
 0x2b9   : > { %v1183_v37 = vsel %vm521_vm11, %v1180_v14, %v1087_v40  ;;  %v993_v0 = vrot.slane %v992_v38, 4  ;;  %v1017_v29 = vrot.slane %v1016_v43, 4  ;;  %v1031_v53 = vmul.f32 %v2414_v8, %v2198_v36 }
 0x2ba   : > { %v1157_v54 = vadd.f32 %v1156_v9, %v1155_v28  ;;  %v1186_v50 = vsel %vm525_vm12, %v1183_v37, %v1111_v21  ;;  %v1055_v1 = vmul.f32 %v2414_v8, %v2202_v56  ;;  %v1079_v44 = vmul.f32 %v2414_v8, %v2210_v60 }
 0x2bb   : > { %v1189_v22 = vsel %vm529_vm13, %v1186_v50, %v1135_v39  ;;  %v994_v30 = vadd.f32 %v993_v0, %v992_v38  ;;  %v1018_v48 = vadd.f32 %v1017_v29, %v1016_v43  ;;  %v1040_v46 = vsel %vm582_vm0, %v1031_v53, 0.0 }
 0x2bc   : > { %v1158_v41 = vrot.slane %v1157_v54, 1  ;;  %v1041_v31 = vrot.slane %v1040_v46, 4  ;;  %v1064_v23 = vsel %vm582_vm0, %v1055_v1, 0.0  ;;  %v1088_v36 = vsel %vm582_vm0, %v1079_v44, 0.0 }
 0x2bd   : > { %v995_v10 = vrot.slane %v994_v30, 2  ;;  %v1019_v13 = vrot.slane %v1018_v48, 2  ;;  %v1065_v24 = vrot.slane %v1064_v23, 4  ;;  %v1089_v34 = vrot.slane %v1088_v36, 4 }
 0x2be   : > { %v1159_v56 = vadd.f32 %v1158_v41, %v1157_v54  ;;  %v1042_v25 = vadd.f32 %v1041_v31, %v1040_v46  ;;  %v1103_v60 = vmul.f32 %v2414_v8, %v2218_v3  ;;  %v1127_v11 = vmul.f32 %v2414_v8, %v2220_v4 }
 0x2bf   : > { %v996_v2 = vadd.f32 %v995_v10, %v994_v30  ;;  %v1020_v18 = vadd.f32 %v1019_v13, %v1018_v48  ;;  %v1066_v49 = vadd.f32 %v1065_v24, %v1064_v23  ;;  %v1090_v15 = vadd.f32 %v1089_v34, %v1088_v36 }
 0x2c0   : > { %v1192_v5 = vsel %vm533_vm14, %v1189_v22, %v1159_v56  ;;  %v1043_v32 = vrot.slane %v1042_v25, 2  ;;  %v1112_v26 = vsel %vm582_vm0, %v1103_v60, 0.0  ;;  %v1136_v33 = vsel %vm582_vm0, %v1127_v11, 0.0 }
 0x2c1   : > { %v1195_v27 = vadd.f32 %v1192_v5, %v2397_v6  ;;  %v997_v52 = vrot.slane %v996_v2, 1  ;;  %v1021_v16 = vrot.slane %v1020_v18, 1  ;;  %v1067_v47 = vrot.slane %v1066_v49, 2 }
 0x2c2   : > { %v1044_v3 = vadd.f32 %v1043_v32, %v1042_v25  ;;  %v1091_v12 = vrot.slane %v1090_v15, 2  ;;  %v1113_v58 = vrot.slane %v1112_v26, 4  ;;  %v1137_v4 = vrot.slane %v1136_v33, 4 }
 0x2c3   : > { %v1198_v28 = vmul.f32 %v1195_v27, %v2225_v7  ;;  %v998_v62 = vadd.f32 %v997_v52, %v996_v2  ;;  %v1022_v42 = vadd.f32 %v1021_v16, %v1020_v18  ;;  %v1068_v55 = vadd.f32 %v1067_v47, %v1066_v49  ;;  %v2600_v18 = vld [vmem:[#allocation13_spill] sm:$0xff]  ;;  %v2601_v49 = vld [vmem:[#allocation14_spill] sm:$0xff] }
 0x2c4   : > { %v1045_v40 = vrot.slane %v1044_v3, 1  ;;  %v1092_v21 = vadd.f32 %v1091_v12, %v1090_v15  ;;  %v1114_v39 = vadd.f32 %v1113_v58, %v1112_v26  ;;  %v1138_v51 = vadd.f32 %v1137_v4, %v1136_v33  ;;  %v2602_v33 = vld [vmem:[#allocation16_spill] sm:$0xff] }
 0x2c5   : > { %1480 = vmatmul.mubr.msk.f32.vlgmr.msra.gmra.mrb[0].mxu1 %vm582_vm0, %v1198_v28  ;;  %v1069_v9 = vrot.slane %v1068_v55, 1  ;;  %v1151_v6 = vmul.f32 %v2414_v8, %v2262_v19  ;;  %v1175_v14 = vsel %vm509_vm8, %v998_v62, %v1022_v42  ;;  %v984_v38 = vmul.f32 %v2427_v57, %v2208_v59 }
 0x2c6   : > { %1482 = vmatprep.mubr.msk.f32.mxu1 %vm1802_vm15, %v2598_v20  ;;  %v1046_v7 = vadd.f32 %v1045_v40, %v1044_v3  ;;  %v1093_v43 = vrot.slane %v1092_v21, 1  ;;  %v1115_v37 = vrot.slane %v1114_v39, 2  ;;  %v1139_v0 = vrot.slane %v1138_v51, 2 }
 0x2c7   : > { %v1070_v29 = vadd.f32 %v1069_v9, %v1068_v55  ;;  %v1160_v53 = vsel %vm582_vm0, %v1151_v6, 0.0  ;;  %v999_v54 = vsel %vm582_vm0, %v984_v38, 0.0  ;;  %v1008_v19 = vmul.f32 %v2427_v57, %v2212_v61 }
 0x2c8   : > { %v1094_v50 = vadd.f32 %v1093_v43, %v1092_v21  ;;  %v1116_v1 = vadd.f32 %v1115_v37, %v1114_v39  ;;  %v1140_v44 = vadd.f32 %v1139_v0, %v1138_v51  ;;  %v1161_v22 = vrot.slane %v1160_v53, 4 }
 0x2c9   : > { %v1178_v59 = vsel %vm513_vm9, %v1175_v14, %v1046_v7  ;;  %v1000_v30 = vrot.slane %v999_v54, 4  ;;  %v1023_v48 = vsel %vm582_vm0, %v1008_v19, 0.0  ;;  %v1032_v46 = vmul.f32 %v2427_v57, %v2216_v63 }
 0x2ca   : > { %v1117_v41 = vrot.slane %v1116_v1, 1  ;;  %v1141_v31 = vrot.slane %v1140_v44, 1  ;;  %v1162_v23 = vadd.f32 %v1161_v22, %v1160_v53  ;;  %v1181_v36 = vsel %vm517_vm10, %v1178_v59, %v1070_v29 }
 0x2cb   : > { %v1184_v10 = vsel %vm521_vm11, %v1181_v36, %v1094_v50  ;;  %v1001_v61 = vadd.f32 %v1000_v30, %v999_v54  ;;  %v1024_v13 = vrot.slane %v1023_v48, 4  ;;  %v1047_v24 = vsel %vm582_vm0, %v1032_v46, 0.0  ;;  %v2603_v46 = vld [vmem:[#allocation15_spill] sm:$0xff] }
 0x2cc   : > { %v1118_v34 = vadd.f32 %v1117_v41, %v1116_v1  ;;  %v1142_v56 = vadd.f32 %v1141_v31, %v1140_v44  ;;  %v1163_v25 = vrot.slane %v1162_v23, 2  ;;  %v1048_v60 = vrot.slane %v1047_v24, 4 }
 0x2cd   : > { %v1002_v11 = vrot.slane %v1001_v61, 2  ;;  %v1025_v2 = vadd.f32 %v1024_v13, %v1023_v48  ;;  %v1056_v63 = vmul.f32 %v2427_v57, %v2600_v18  ;;  %v1080_v15 = vmul.f32 %v2427_v57, %v2601_v49 }
 0x2ce   : > { %v1164_v5 = vadd.f32 %v1163_v25, %v1162_v23  ;;  %v1187_v32 = vsel %vm525_vm12, %v1184_v10, %v1118_v34  ;;  %v1049_v26 = vadd.f32 %v1048_v60, %v1047_v24  ;;  %v1104_v27 = vmul.f32 %v2427_v57, %v2602_v33 }
 0x2cf   : > { %v1190_v52 = vsel %vm529_vm13, %v1187_v32, %v1142_v56  ;;  %v1003_v16 = vadd.f32 %v1002_v11, %v1001_v61  ;;  %v1026_v47 = vrot.slane %v1025_v2, 2  ;;  %v1071_v3 = vsel %vm582_vm0, %v1056_v63, 0.0 }
 0x2d0   : > { %v1165_v12 = vrot.slane %v1164_v5, 1  ;;  %v1050_v58 = vrot.slane %v1049_v26, 2  ;;  %v1072_v4 = vrot.slane %v1071_v3, 4  ;;  %v1095_v28 = vsel %vm582_vm0, %v1080_v15, 0.0 }
 0x2d1   : > { %v1004_v62 = vrot.slane %v1003_v16, 1  ;;  %v1027_v42 = vadd.f32 %v1026_v47, %v1025_v2  ;;  %v1096_v55 = vrot.slane %v1095_v28, 4  ;;  %v1119_v40 = vsel %vm582_vm0, %v1104_v27, 0.0 }
 0x2d2   : > { %v1166_v21 = vadd.f32 %v1165_v12, %v1164_v5  ;;  %v1051_v39 = vadd.f32 %v1050_v58, %v1049_v26  ;;  %v1073_v51 = vadd.f32 %v1072_v4, %v1071_v3  ;;  %v1120_v9 = vrot.slane %v1119_v40, 4 }
 0x2d3   : > { %v1005_v6 = vadd.f32 %v1004_v62, %v1003_v16  ;;  %v1028_v14 = vrot.slane %v1027_v42, 1  ;;  %v1097_v38 = vadd.f32 %v1096_v55, %v1095_v28  ;;  %v1128_v7 = vmul.f32 %v2427_v57, %v2307_v45 }
 0x2d4   : > { %v1193_v43 = vsel %vm533_vm14, %v1190_v52, %v1166_v21  ;;  %v1052_v37 = vrot.slane %v1051_v39, 1  ;;  %v1074_v0 = vrot.slane %v1073_v51, 2  ;;  %v1121_v29 = vadd.f32 %v1120_v9, %v1119_v40 }
 0x2d5   : > { %v1196_v53 = vadd.f32 %v1193_v43, %v2414_v8  ;;  %v1029_v54 = vadd.f32 %v1028_v14, %v1027_v42  ;;  %v1098_v19 = vrot.slane %v1097_v38, 2  ;;  %v1143_v50 = vsel %vm582_vm0, %v1128_v7, 0.0 }
 0x2d6   : > { %v1053_v1 = vadd.f32 %v1052_v37, %v1051_v39  ;;  %v1075_v44 = vadd.f32 %v1074_v0, %v1073_v51  ;;  %v1122_v22 = vrot.slane %v1121_v29, 2  ;;  %v1144_v59 = vrot.slane %v1143_v50, 4 }
 0x2d7   : > { %v1199_v30 = vmul.f32 %v1196_v53, %v2259_v17  ;;  %v1099_v48 = vadd.f32 %v1098_v19, %v1097_v38  ;;  %v1152_v45 = vmul.f32 %v2427_v57, %v2603_v46  ;;  %v1176_v41 = vsel %vm509_vm8, %v1005_v6, %v1029_v54 }
 0x2d8   : > { %v1076_v31 = vrot.slane %v1075_v44, 1  ;;  %v1123_v23 = vadd.f32 %v1122_v22, %v1121_v29  ;;  %v1145_v36 = vadd.f32 %v1144_v59, %v1143_v50  ;;  %v1179_v61 = vsel %vm513_vm9, %v1176_v41, %v1053_v1 }
 0x2d9   : > { %1483 = vmatmul.mubr.msk.f32.gmra.mrb[2].mxu1 %vm582_vm0, %v1199_v30  ;;  %v1100_v8 = vrot.slane %v1099_v48, 1  ;;  %v1167_v10 = vsel %vm582_vm0, %v1152_v45, 0.0 }
 0x2da   : > { %1485 = vmatprep.mubr.msk.f32.mxu1 %vm1802_vm15, %v2598_v20  ;;  %v1077_v17 = vadd.f32 %v1076_v31, %v1075_v44  ;;  %v1124_v13 = vrot.slane %v1123_v23, 1  ;;  %v1146_v24 = vrot.slane %v1145_v36, 2  ;;  %v1168_v34 = vrot.slane %v1167_v10, 4 }
 0x2db   : > { %v1101_v56 = vadd.f32 %v1100_v8, %v1099_v48 }
 0x2dc   : > { %v1147_v25 = vadd.f32 %v1146_v24, %v1145_v36  ;;  %v1169_v60 = vadd.f32 %v1168_v34, %v1167_v10  ;;  %v1182_v11 = vsel %vm517_vm10, %v1179_v61, %v1077_v17  ;;  %v1125_v18 = vadd.f32 %v1124_v13, %v1123_v23 }
 0x2dd   : > { %v1185_v2 = vsel %vm521_vm11, %v1182_v11, %v1101_v56 }
 0x2de   : > { %v1148_v63 = vrot.slane %v1147_v25, 1  ;;  %v1170_v49 = vrot.slane %v1169_v60, 2  ;;  %v1188_v5 = vsel %vm525_vm12, %v1185_v2, %v1125_v18 }
 0x2e0   : > { %v1171_v15 = vadd.f32 %v1170_v49, %v1169_v60  ;;  %v1149_v32 = vadd.f32 %v1148_v63, %v1147_v25 }
 0x2e2   : > { %v1172_v20 = vrot.slane %v1171_v15, 1  ;;  %v1191_v26 = vsel %vm529_vm13, %v1188_v5, %v1149_v32 }
 0x2e4   : > { %v1173_v33 = vadd.f32 %v1172_v20, %v1171_v15 }
 0x2e6   : > { %v1194_v27 = vsel %vm533_vm14, %v1191_v26, %v1173_v33 }
 0x2e7   : > { %v1197_v52 = vadd.f32 %v1194_v27, %v2427_v57 }
 0x2e9   : > { %v1200_v16 = vmul.f32 %v1197_v52, %v2310_v35 }
 0x2eb   : > { %1486 = vmatmul.mubr.msk.f32.gmra.mrb[4].mxu1 %vm582_vm0, %v1200_v16 }
 0x398   : > { %v1281_v47 = vpop.f32.mrb[0].mxu1 }
 0x399   : > { %v1295_v3 = vmax.f32 %v1281_v47, 0.0  ;;  %v1481_v12 = vpop.f32.mrb[1].mxu1 }
 0x39b   : > { %1298 = vst.msk [vmem:[%s242_s28] sm:$0xff] %vm582_vm0, %v1295_v3 }
 0x3ac   : > { %v1286_v58 = vpop.f32.mrb[2].mxu1 }
 0x3ad   : > { %v1296_v4 = vmax.f32 %v1286_v58, 0.0  ;;  %v1484_v28 = vpop.f32.mrb[3].mxu1 }
 0x3af   : > { %1299 = vst.msk [vmem:[%s242_s28 + $0x8] sm:$0xff] %vm582_vm0, %v1296_v4 }
 0x3be   : > { %v1291_v35 = vpop.f32.mrb[4].mxu1 }
 0x3bf   : > { %v1297_v57 = vmax.f32 %v1291_v35, 0.0  ;;  %v1487_v62 = vpop.f32.mrb[5].mxu1 }
 0x3c1   : > { %1300 = vst.msk [vmem:[%s242_s28 + $0x10] sm:$0xff] %vm582_vm0, %v1297_v57 }
 0x3c2   : > { %1718 = shalt.err (!%p1715_p6)
}
 0x3c3   : > { %s1719_s18 = scalar_lea.hbm %s2520_s25, 384  ;;  %s1723_s10 = scalar_lea.hbm %s2568_s3, 768 }
 0x3c4   : > { %p1720_p8 = scmp.ne.s32.totalorder %s2520_s25, %s1719_s18  ;;  %p1724_p4 = scmp.lt.u32.totalorder %s2520_s25, %s2568_s3 }
 0x3c5   : > { %p1725_p11 = scmp.lt.u32.totalorder %s1723_s10, %s1719_s18  ;;  %p1727_p3 = scmp.lt.u32.totalorder %s1719_s18, %s2520_s25 }
 0x3c6   : > { %p1721_p10 = pnand %p1720_p8, %p1921_p12 }
 0x3c7   : > { %p1726_p13 = por %p1725_p11, %p1724_p4 }
 0x3c8   : > { %p1722_p0 = pneg %p1721_p10 }
 0x3c9   : > { %p1728_p7 = por %p1727_p3, %p1726_p13 }
 0x3cb   : > { %p1729_p9 = pnand %p1728_p7, %p1722_p0 }
 0x3cd   : > { %1732 = shalt.err (!%p1729_p9)
}
 0x3ce   : > { %s1805_s7 = smov 128   ;;  %s1806_s28 = smov 8  }
 0x3cf   : > { %1511 = dma.vmem_to_hbm [thread:$0]  (%p1921_p12), %s2515_s11, 384, %s2520_s25, %s1302_s27, %s1805_s7, %s1805_s7, %s1806_s28  }
 0x3d0 PF: > { %s1330_s30 = sand.u32 1, %s1767_s12   ;;  %p2604_p1 = scmp.ne.s32.totalorder %s2580_s19, 0 }
 0x3d1   : > { %p2605_p5 = scmp.ge.s32.totalorder %s1779_s15, 2  ;;  %s1331_s4 = scalar_lea.sflag [#allocation4], %s1330_s30 }
 0x3d3   : > { %p1525_p2 = pnand %p2605_p5, %p2604_p1 }
 0x3d5   : > { %1762 = dma.done.wait (!%p1525_p2), %s1331_s4, 384  }
 0x3d6   : > { %1764 = vsyncadd (!%p1525_p2), %s1331_s4, 4294966912  ;;  %p19_p6 = scmp.ge.s32.totalorder %s1883_s24, 4   ;;  %s2606_s12 = smov %s1771_s13 }
 0x3d7   : > { %s2607_s13 = smov %s1775_s14  ;;  %s2608_s14 = smov %s1917_s17 }
 0x3d8   : > { %s2609_s15 = smov %s1883_s24  ;;  %21 = sbr.rel (!%p19_p6) target bundleno = 7 (0x7), region = 95 }
 0x3df   :  { %1336 = vsyncpa [#allocation3], 1 }
 0x3e0   :  { %1338 = vsyncpa [#allocation3 + $0x1], 1 }
 0x3e1   :  { %1339 = vsyncpa [#allocation6], 1 }
 0x3e2   :  { %1341 = vsyncpa [#allocation6 + $0x1], 1 }
 0x3e3   :  { %1342 = vsyncpa [#allocation4], 1 }
 0x3e4   :  { %1344 = vsyncpa [#allocation4 + $0x1], 1 }

</bundles_post_ra>
